<compile_context>
chip_gen: v5e
topology: v5e:2x2
jax: 0.10.0
libtpu: 0.0.40
codegen_flags: <defaults>
</compile_context>

<pallas_src>
import functools

import jax
import jax.numpy as jnp
from jax import lax
from jax.experimental import pallas as pl
from jax.experimental.pallas import tpu as pltpu


def _round_up(x, m):
    return (x + m - 1) // m * m


def _pick_block_and_vmem():
    """Per-generation tile size and explicit scoped-VMEM limit."""
    try:
        vmem = int(pltpu.get_tpu_info().vmem_capacity_bytes)
    except Exception:
        vmem = 64 << 20  # conservative (v7x per-TC)
    if vmem >= (100 << 20):          # v5e / v6e: 128 MiB physical VMEM
        return 1024, 96 << 20
    return 512, 48 << 20             # v7x: 64 MiB physical VMEM


def _supcon_kernel(anchor_ref, contrastT_ref, lab_r_ref, lab_c_ref, out_ref,
                   denom_acc, pos_cnt, pos_dot,
                   *, n_valid, block_rows, block_cols):
    r = pl.program_id(0)
    c = pl.program_id(1)
    last_c = pl.num_programs(1) - 1

    @pl.when(c == 0)
    def _init():
        denom_acc[...] = jnp.zeros_like(denom_acc)
        pos_cnt[...] = jnp.zeros_like(pos_cnt)
        pos_dot[...] = jnp.zeros_like(pos_dot)

    # logits[i, j] = <anchor_i, contrast_j> / T; normalization and the 1/T
    # scale are folded into the operands in the wrapper.  Canonical (M,K)x(K,N)
    # contraction -> no implicit transpose of the contrast tile.
    logits = lax.dot_general(anchor_ref[...], contrastT_ref[...],
                             (((1,), (0,)), ((), ())),
                             preferred_element_type=jnp.float32)

    # Broadcast label compare: (TR,1) vs (1,TC) -> (TR,TC) bool (no iota tiles).
    pos_bool = lab_r_ref[...] == lab_c_ref[...]
    # NOTE: faithful to the PyTorch reference, no row-max subtraction (unit-norm
    # features keep |logits| <= 1/T so exp stays in f32 range).
    exp_l = jnp.exp(logits)

    n_fold = block_cols // 128

    def _fold(x):
        # (TR, TC) -> (TR, 128) via lane-aligned VPU adds (no cross-lane reduce).
        acc = x[:, 0:128]
        for k in range(1, n_fold):
            acc = acc + x[:, k * 128:(k + 1) * 128]
        return acc

    def _accumulate(pos_f, exp_m):
        denom_acc[...] += _fold(exp_m)
        pos_cnt[...] += _fold(pos_f)
        pos_dot[...] += _fold(pos_f * logits)

    # Mask work only where needed: tiles overlapping the diagonal and the last
    # column block (which holds all padded columns).
    row_lo = r * block_rows
    col_lo = c * block_cols
    diag_overlap = (row_lo < col_lo + block_cols) & (col_lo < row_lo + block_rows)
    needs_mask = diag_overlap | (c == last_c)

    @pl.when(needs_mask)
    def _masked():
        row_ids = row_lo + lax.broadcasted_iota(jnp.int32, (block_rows, 1), 0)
        col_ids = col_lo + lax.broadcasted_iota(jnp.int32, (1, block_cols), 1)
        keep = (row_ids != col_ids) & (col_ids < n_valid)   # drop self + padding
        pos_f = (pos_bool & keep).astype(jnp.float32)
        exp_m = jnp.where(keep, exp_l, 0.0)
        _accumulate(pos_f, exp_m)

    @pl.when(jnp.logical_not(needs_mask))
    def _fast():
        _accumulate(pos_bool.astype(jnp.float32), exp_l)

    @pl.when(c == last_c)
    def _finalize():
        # Single cross-lane reduce per row block.
        cnt = jnp.sum(pos_cnt[...], axis=1, keepdims=True)
        denom = jnp.sum(denom_acc[...], axis=1, keepdims=True)
        pdot = jnp.sum(pos_dot[...], axis=1, keepdims=True)
        # sum_j pos*(logits - log(denom)) == pos_dot - log(denom)*cnt; the
        # [TR,1] divide is tiny and kept exact.
        mean_lp = (pdot - jnp.log(denom) * cnt) / jnp.maximum(cnt, 1.0)
        # Guard anchors with no positives (padded rows / singleton labels).
        out_ref[...] = jnp.where(cnt > 0.0, -mean_lp, 0.0)


def text_supcon_loss(features, labels, temperature=0.07, *,
                     use_bf16_matmul=False, block=None):
    """features: [B, V, D] float, labels: [B] int -> scalar f32 loss."""
    B, V, D = features.shape
    N = B * V

    auto_block, vmem_limit = _pick_block_and_vmem()
    if block is None:
        block = auto_block

    # Lane-dense features: pad D to a multiple of 128 (zero padding does not
    # change norms or dot products).
    D_pad = max(128, _round_up(D, 128))

    # Tile choice: one column block for small N; otherwise `block` tiles with N
    # padded to a multiple of the block.  Keep >= 2 row blocks when possible so
    # the "parallel" axis feeds both v7x TensorCores.
    if N <= block:
        N_pad = _round_up(N, 128)
        TC = N_pad
        TR = N_pad // 2 if N_pad >= 256 else N_pad
    else:
        TR = TC = block
        N_pad = _round_up(N, block)

    # contrast_feature = cat(unbind(features, dim=1), dim=0) -> [N, D].
    contrast = jnp.transpose(features, (1, 0, 2)).reshape(N, D).astype(jnp.float32)

    # One-shot normalization (matches F.normalize: x / max(||x||, 1e-12)) and
    # 1/temperature fold, done in the wrapper (O(N*D), memory-bound, free
    # relative to the O(N^2*D) kernel).
    norms = jnp.maximum(jnp.linalg.norm(contrast, axis=-1, keepdims=True), 1e-12)
    feat_n = contrast / norms

    in_dtype = jnp.bfloat16 if use_bf16_matmul else jnp.float32
    anchor = jnp.zeros((N_pad, D_pad), jnp.float32).at[:N, :D].set(
        feat_n * (1.0 / float(temperature))).astype(in_dtype)
    contrast_t = jnp.zeros((D_pad, N_pad), jnp.float32).at[:D, :N].set(
        feat_n.T).astype(in_dtype)

    # Tiled labels (row v*B + b carries labels[b]); padding labeled -1.
    lab = jnp.tile(labels.astype(jnp.int32), V)
    lab_pad = jnp.full((N_pad,), -1, jnp.int32).at[:N].set(lab)
    lab_row = lab_pad.reshape(N_pad, 1)
    lab_col = lab_pad.reshape(1, N_pad)

    grid = (N_pad // TR, N_pad // TC)

    kernel = functools.partial(
        _supcon_kernel,
        n_valid=N,
        block_rows=TR,
        block_cols=TC,
    )

    neg_mean_log_prob = pl.pallas_call(
        kernel,
        out_shape=jax.ShapeDtypeStruct((N_pad, 1), jnp.float32),
        grid_spec=pltpu.PrefetchScalarGridSpec(
            num_scalar_prefetch=0,
            grid=grid,
            in_specs=[
                pl.BlockSpec((TR, D_pad), lambda r, c: (r, 0)),   # anchor rows (pre-scaled)
                pl.BlockSpec((D_pad, TC), lambda r, c: (0, c)),   # contrast^T cols
                pl.BlockSpec((TR, 1), lambda r, c: (r, 0)),       # row labels
                pl.BlockSpec((1, TC), lambda r, c: (0, c)),       # col labels
            ],
            out_specs=pl.BlockSpec((TR, 1), lambda r, c: (r, 0)),
            scratch_shapes=[
                pltpu.VMEM((TR, 128), jnp.float32),   # lane-folded denominator
                pltpu.VMEM((TR, 128), jnp.float32),   # lane-folded positive count
                pltpu.VMEM((TR, 128), jnp.float32),   # lane-folded sum pos*logits
            ],
        ),
        compiler_params=pltpu.CompilerParams(
            dimension_semantics=("parallel", "arbitrary"),
            vmem_limit_bytes=vmem_limit),
    )(anchor, contrast_t, lab_row, lab_col)

    # Final mean over the N real anchors (padded rows emit 0 and are sliced off).
    return jnp.sum(neg_mean_log_prob[:N, 0]) / N


def _reference_loss(features, labels, temperature=0.07):
    """Pure-JAX reference mirroring the PyTorch module line-by-line."""
    B, V, D = features.shape
    f = features / jnp.maximum(
        jnp.linalg.norm(features, axis=2, keepdims=True), 1e-12)
    contrast = jnp.concatenate([f[:, v, :] for v in range(V)], axis=0)
    logits = (contrast @ contrast.T) / temperature
    mask = jnp.tile((labels[:, None] == labels[None, :]).astype(jnp.float32), (V, V))
    logits_mask = 1.0 - jnp.eye(B * V, dtype=jnp.float32)
    mask = mask * logits_mask
    exp_logits = jnp.exp(logits) * logits_mask
    log_prob = logits - jnp.log(exp_logits.sum(1, keepdims=True))
    mean_log_prob_pos = (mask * log_prob).sum(1) / mask.sum(1)
    return -mean_log_prob_pos.mean()


if __name__ == "__main__":
    key = jax.random.PRNGKey(0)
    k_feat, k_lab, k_feat2, k_lab2 = jax.random.split(key, 4)

    # --- Test 1: small shapes, single tile --------------------------------
    B, V, D = 8, 2, 32  # batch, n_views, hidden
    features = jax.random.normal(k_feat, (B, V, D), dtype=jnp.float32)
    labels = jax.random.randint(k_lab, (B,), 0, 3, dtype=jnp.int32)

    ref = jax.block_until_ready(_reference_loss(features, labels, temperature=0.07))

    loss_f32 = jax.block_until_ready(
        text_supcon_loss(features, labels, temperature=0.07, use_bf16_matmul=False))
    assert jnp.isfinite(loss_f32), loss_f32
    assert jnp.allclose(loss_f32, ref, rtol=2e-3, atol=2e-3), (loss_f32, ref)

    loss_bf16 = jax.block_until_ready(
        text_supcon_loss(features, labels, temperature=0.07, use_bf16_matmul=True))
    assert jnp.isfinite(loss_bf16), loss_bf16
    assert jnp.allclose(loss_bf16, ref, rtol=1e-1, atol=1e-1), (loss_bf16, ref)

    # --- Test 2: multi-tile grid (exercises fast / masked / padded paths) --
    B2, V2, D2 = 96, 2, 32   # N = 192, forced block=128 -> 2x2 grid with padding
    features2 = jax.random.normal(k_feat2, (B2, V2, D2), dtype=jnp.float32)
    labels2 = jax.random.randint(k_lab2, (B2,), 0, 6, dtype=jnp.int32)

    ref2 = jax.block_until_ready(_reference_loss(features2, labels2, temperature=0.07))
    loss2 = jax.block_until_ready(
        text_supcon_loss(features2, labels2, temperature=0.07, block=128))
    assert jnp.isfinite(loss2), loss2
    assert jnp.allclose(loss2, ref2, rtol=2e-3, atol=2e-3), (loss2, ref2)

    print("KERNEL_OK")
</pallas_src>

<mosaic_0001>
module attributes {stable_mosaic.version = 11 : i64} {
  func.func @_supcon_kernel(%arg0: i32, %arg1: i32, %arg2: memref<128x128xf32, #tpu.memory_space<vmem>>, %arg3: memref<128x128xf32, #tpu.memory_space<vmem>>, %arg4: memref<128x1xi32, #tpu.memory_space<vmem>>, %arg5: memref<1x128xi32, #tpu.memory_space<vmem>>, %arg6: memref<128x1xf32, #tpu.memory_space<vmem>>, %arg7: memref<128x128xf32, #tpu.memory_space<vmem>>, %arg8: memref<128x128xf32, #tpu.memory_space<vmem>>, %arg9: memref<128x128xf32, #tpu.memory_space<vmem>>) attributes {dimension_semantics = [#tpu.dimension_semantics<parallel>, #tpu.dimension_semantics<arbitrary>], iteration_bounds = array<i64: 1, 1>, scalar_prefetch = 0 : i64, scratch_operands = 3 : i64, tpu.core_type = #tpu.core_type<tc>, window_params = [{transform_indices = @transform_0, window_bounds = array<i64: 128, 128>}, {transform_indices = @transform_1, window_bounds = array<i64: 128, 128>}, {transform_indices = @transform_2, window_bounds = array<i64: 128, 1>}, {transform_indices = @transform_3, window_bounds = array<i64: 1, 128>}, {transform_indices = @transform_4, window_bounds = array<i64: 128, 1>}]} {
    %c0_i32 = arith.constant 0 : i32
    %0 = arith.cmpi eq, %arg1, %c0_i32 : i32
    %1 = arith.extui %0 : i1 to i32
    %c0_i32_0 = arith.constant 0 : i32
    %2 = arith.cmpi ne, %1, %c0_i32_0 : i32
    scf.if %2 {
      %cst_16 = arith.constant 0.000000e+00 : f32
      %29 = vector.broadcast %cst_16 : f32 to vector<128x128xf32>
      %c0_17 = arith.constant 0 : index
      %c0_18 = arith.constant 0 : index
      %30 = vector.load %arg7[%c0_17, %c0_18] : memref<128x128xf32, #tpu.memory_space<vmem>>, vector<128x128xf32>
      tpu.vector_store %arg7[%c0_17, %c0_18], %29 {strides = array<i32>} : memref<128x128xf32, #tpu.memory_space<vmem>>, vector<128x128xf32>,
      %cst_19 = arith.constant 0.000000e+00 : f32
      %31 = vector.broadcast %cst_19 : f32 to vector<128x128xf32>
      %c0_20 = arith.constant 0 : index
      %c0_21 = arith.constant 0 : index
      %32 = vector.load %arg8[%c0_20, %c0_21] : memref<128x128xf32, #tpu.memory_space<vmem>>, vector<128x128xf32>
      tpu.vector_store %arg8[%c0_20, %c0_21], %31 {strides = array<i32>} : memref<128x128xf32, #tpu.memory_space<vmem>>, vector<128x128xf32>,
      %cst_22 = arith.constant 0.000000e+00 : f32
      %33 = vector.broadcast %cst_22 : f32 to vector<128x128xf32>
      %c0_23 = arith.constant 0 : index
      %c0_24 = arith.constant 0 : index
      %34 = vector.load %arg9[%c0_23, %c0_24] : memref<128x128xf32, #tpu.memory_space<vmem>>, vector<128x128xf32>
      tpu.vector_store %arg9[%c0_23, %c0_24], %33 {strides = array<i32>} : memref<128x128xf32, #tpu.memory_space<vmem>>, vector<128x128xf32>,
    } else {
    }
    %c0 = arith.constant 0 : index
    %c0_1 = arith.constant 0 : index
    %3 = vector.load %arg2[%c0, %c0_1] : memref<128x128xf32, #tpu.memory_space<vmem>>, vector<128x128xf32>
    %c0_2 = arith.constant 0 : index
    %c0_3 = arith.constant 0 : index
    %4 = vector.load %arg3[%c0_2, %c0_3] : memref<128x128xf32, #tpu.memory_space<vmem>>, vector<128x128xf32>
    %cst = arith.constant dense<0.000000e+00> : vector<128x128xf32>
    %5 = tpu.matmul %3, %4, %cst {dimension_numbers = #tpu.dot_dimension_numbers<[1], [0], [0], [1], [0, 0, 1, 1], [], []>} : vector<128x128xf32>, vector<128x128xf32>, vector<128x128xf32> -> vector<128x128xf32>
    %c0_4 = arith.constant 0 : index
    %c0_5 = arith.constant 0 : index
    %6 = vector.load %arg4[%c0_4, %c0_5] : memref<128x1xi32, #tpu.memory_space<vmem>>, vector<128x1xi32>
    %c0_6 = arith.constant 0 : index
    %c0_7 = arith.constant 0 : index
    %7 = vector.load %arg5[%c0_6, %c0_7] : memref<1x128xi32, #tpu.memory_space<vmem>>, vector<1x128xi32>
    %8 = vector.broadcast %6 : vector<128x1xi32> to vector<128x128xi32>
    %9 = vector.broadcast %7 : vector<1x128xi32> to vector<128x128xi32>
    %10 = arith.cmpi eq, %8, %9 : vector<128x128xi32>
    %11 = math.exp %5 : vector<128x128xf32>
    %c128_i32 = arith.constant 128 : i32
    %12 = arith.muli %arg0, %c128_i32 : i32
    %c128_i32_8 = arith.constant 128 : i32
    %13 = arith.muli %arg1, %c128_i32_8 : i32
    %c128_i32_9 = arith.constant 128 : i32
    %14 = arith.addi %13, %c128_i32_9 : i32
    %15 = arith.cmpi slt, %12, %14 : i32
    %c128_i32_10 = arith.constant 128 : i32
    %16 = arith.addi %12, %c128_i32_10 : i32
    %17 = arith.cmpi slt, %13, %16 : i32
    %18 = arith.andi %15, %17 : i1
    %c0_i32_11 = arith.constant 0 : i32
    %19 = arith.cmpi eq, %arg1, %c0_i32_11 : i32
    %20 = arith.ori %18, %19 : i1
    %21 = arith.extui %20 : i1 to i32
    %c0_i32_12 = arith.constant 0 : i32
    %22 = arith.cmpi ne, %21, %c0_i32_12 : i32
    scf.if %22 {
      %29 = tpu.iota {dimensions = array<i32: 0>} : vector<128x1xi32>
      %30 = vector.broadcast %12 : i32 to vector<128x1xi32>
      %31 = arith.addi %30, %29 : vector<128x1xi32>
      %32 = tpu.iota {dimensions = array<i32: 1>} : vector<1x128xi32>
      %33 = vector.broadcast %13 : i32 to vector<1x128xi32>
      %34 = arith.addi %33, %32 : vector<1x128xi32>
      %35 = vector.broadcast %31 : vector<128x1xi32> to vector<128x128xi32>
      %36 = vector.broadcast %34 : vector<1x128xi32> to vector<128x128xi32>
      %37 = arith.cmpi ne, %35, %36 : vector<128x128xi32>
      %c16_i32 = arith.constant 16 : i32
      %38 = vector.broadcast %c16_i32 : i32 to vector<1x128xi32>
      %39 = arith.cmpi slt, %34, %38 : vector<1x128xi32>
      %40 = vector.broadcast %39 : vector<1x128xi1> to vector<128x128xi1>
      %41 = arith.andi %37, %40 : vector<128x128xi1>
      %42 = arith.andi %10, %41 : vector<128x128xi1>
      %43 = arith.extui %42 : vector<128x128xi1> to vector<128x128xi32>
      %44 = arith.sitofp %43 : vector<128x128xi32> to vector<128x128xf32>
      %cst_16 = arith.constant 0.000000e+00 : f32
      %45 = vector.broadcast %cst_16 : f32 to vector<128x128xf32>
      %46 = arith.select %41, %11, %45 : vector<128x128xi1>, vector<128x128xf32>
      %c0_17 = arith.constant 0 : index
      %c0_18 = arith.constant 0 : index
      %47 = vector.load %arg7[%c0_17, %c0_18] : memref<128x128xf32, #tpu.memory_space<vmem>>, vector<128x128xf32>
      %48 = arith.addf %47, %46 : vector<128x128xf32>
      %c0_19 = arith.constant 0 : index
      %c0_20 = arith.constant 0 : index
      %49 = vector.load %arg7[%c0_19, %c0_20] : memref<128x128xf32, #tpu.memory_space<vmem>>, vector<128x128xf32>
      tpu.vector_store %arg7[%c0_19, %c0_20], %48 {strides = array<i32>} : memref<128x128xf32, #tpu.memory_space<vmem>>, vector<128x128xf32>,
      %c0_21 = arith.constant 0 : index
      %c0_22 = arith.constant 0 : index
      %50 = vector.load %arg8[%c0_21, %c0_22] : memref<128x128xf32, #tpu.memory_space<vmem>>, vector<128x128xf32>
      %51 = arith.addf %50, %44 : vector<128x128xf32>
      %c0_23 = arith.constant 0 : index
      %c0_24 = arith.constant 0 : index
      %52 = vector.load %arg8[%c0_23, %c0_24] : memref<128x128xf32, #tpu.memory_space<vmem>>, vector<128x128xf32>
      tpu.vector_store %arg8[%c0_23, %c0_24], %51 {strides = array<i32>} : memref<128x128xf32, #tpu.memory_space<vmem>>, vector<128x128xf32>,
      %c0_25 = arith.constant 0 : index
      %c0_26 = arith.constant 0 : index
      %53 = vector.load %arg9[%c0_25, %c0_26] : memref<128x128xf32, #tpu.memory_space<vmem>>, vector<128x128xf32>
      %54 = arith.mulf %44, %5 : vector<128x128xf32>
      %55 = arith.addf %53, %54 : vector<128x128xf32>
      %c0_27 = arith.constant 0 : index
      %c0_28 = arith.constant 0 : index
      %56 = vector.load %arg9[%c0_27, %c0_28] : memref<128x128xf32, #tpu.memory_space<vmem>>, vector<128x128xf32>
      tpu.vector_store %arg9[%c0_27, %c0_28], %55 {strides = array<i32>} : memref<128x128xf32, #tpu.memory_space<vmem>>, vector<128x128xf32>,
    } else {
    }
    %true = arith.constant true
    %23 = arith.xori %20, %true : i1
    %24 = arith.extui %23 : i1 to i32
    %c0_i32_13 = arith.constant 0 : i32
    %25 = arith.cmpi ne, %24, %c0_i32_13 : i32
    scf.if %25 {
      %29 = arith.extui %10 : vector<128x128xi1> to vector<128x128xi32>
      %30 = arith.sitofp %29 : vector<128x128xi32> to vector<128x128xf32>
      %c0_16 = arith.constant 0 : index
      %c0_17 = arith.constant 0 : index
      %31 = vector.load %arg7[%c0_16, %c0_17] : memref<128x128xf32, #tpu.memory_space<vmem>>, vector<128x128xf32>
      %32 = arith.addf %31, %11 : vector<128x128xf32>
      %c0_18 = arith.constant 0 : index
      %c0_19 = arith.constant 0 : index
      %33 = vector.load %arg7[%c0_18, %c0_19] : memref<128x128xf32, #tpu.memory_space<vmem>>, vector<128x128xf32>
      tpu.vector_store %arg7[%c0_18, %c0_19], %32 {strides = array<i32>} : memref<128x128xf32, #tpu.memory_space<vmem>>, vector<128x128xf32>,
      %c0_20 = arith.constant 0 : index
      %c0_21 = arith.constant 0 : index
      %34 = vector.load %arg8[%c0_20, %c0_21] : memref<128x128xf32, #tpu.memory_space<vmem>>, vector<128x128xf32>
      %35 = arith.addf %34, %30 : vector<128x128xf32>
      %c0_22 = arith.constant 0 : index
      %c0_23 = arith.constant 0 : index
      %36 = vector.load %arg8[%c0_22, %c0_23] : memref<128x128xf32, #tpu.memory_space<vmem>>, vector<128x128xf32>
      tpu.vector_store %arg8[%c0_22, %c0_23], %35 {strides = array<i32>} : memref<128x128xf32, #tpu.memory_space<vmem>>, vector<128x128xf32>,
      %c0_24 = arith.constant 0 : index
      %c0_25 = arith.constant 0 : index
      %37 = vector.load %arg9[%c0_24, %c0_25] : memref<128x128xf32, #tpu.memory_space<vmem>>, vector<128x128xf32>
      %38 = arith.mulf %30, %5 : vector<128x128xf32>
      %39 = arith.addf %37, %38 : vector<128x128xf32>
      %c0_26 = arith.constant 0 : index
      %c0_27 = arith.constant 0 : index
      %40 = vector.load %arg9[%c0_26, %c0_27] : memref<128x128xf32, #tpu.memory_space<vmem>>, vector<128x128xf32>
      tpu.vector_store %arg9[%c0_26, %c0_27], %39 {strides = array<i32>} : memref<128x128xf32, #tpu.memory_space<vmem>>, vector<128x128xf32>,
    } else {
    }
    %c0_i32_14 = arith.constant 0 : i32
    %26 = arith.cmpi eq, %arg1, %c0_i32_14 : i32
    %27 = arith.extui %26 : i1 to i32
    %c0_i32_15 = arith.constant 0 : i32
    %28 = arith.cmpi ne, %27, %c0_i32_15 : i32
    scf.if %28 {
      %c0_16 = arith.constant 0 : index
      %c0_17 = arith.constant 0 : index
      %29 = vector.load %arg8[%c0_16, %c0_17] : memref<128x128xf32, #tpu.memory_space<vmem>>, vector<128x128xf32>
      %cst_18 = arith.constant dense<0.000000e+00> : vector<128xf32>
      %30 = vector.multi_reduction <add>, %29, %cst_18 [1] : vector<128x128xf32> to vector<128xf32>
      %31 = vector.shape_cast %30 : vector<128xf32> to vector<128x1xf32>
      %c0_19 = arith.constant 0 : index
      %c0_20 = arith.constant 0 : index
      %32 = vector.load %arg7[%c0_19, %c0_20] : memref<128x128xf32, #tpu.memory_space<vmem>>, vector<128x128xf32>
      %cst_21 = arith.constant dense<0.000000e+00> : vector<128xf32>
      %33 = vector.multi_reduction <add>, %32, %cst_21 [1] : vector<128x128xf32> to vector<128xf32>
      %34 = vector.shape_cast %33 : vector<128xf32> to vector<128x1xf32>
      %c0_22 = arith.constant 0 : index
      %c0_23 = arith.constant 0 : index
      %35 = vector.load %arg9[%c0_22, %c0_23] : memref<128x128xf32, #tpu.memory_space<vmem>>, vector<128x128xf32>
      %cst_24 = arith.constant dense<0.000000e+00> : vector<128xf32>
      %36 = vector.multi_reduction <add>, %35, %cst_24 [1] : vector<128x128xf32> to vector<128xf32>
      %37 = vector.shape_cast %36 : vector<128xf32> to vector<128x1xf32>
      %38 = math.log %34 : vector<128x1xf32>
      %39 = arith.mulf %38, %31 : vector<128x1xf32>
      %40 = arith.subf %37, %39 : vector<128x1xf32>
      %cst_25 = arith.constant 1.000000e+00 : f32
      %41 = vector.broadcast %cst_25 : f32 to vector<128x1xf32>
      %42 = arith.maximumf %31, %41 : vector<128x1xf32>
      %43 = arith.divf %40, %42 : vector<128x1xf32>
      %cst_26 = arith.constant 0.000000e+00 : f32
      %44 = vector.broadcast %cst_26 : f32 to vector<128x1xf32>
      %45 = arith.cmpf ogt, %31, %44 : vector<128x1xf32>
      %cst_27 = arith.constant 0.000000e+00 : f32
      %46 = vector.broadcast %cst_27 : f32 to vector<128x1xf32>
      %47 = arith.subf %46, %43 : vector<128x1xf32>
      %cst_28 = arith.constant 0.000000e+00 : f32
      %48 = vector.broadcast %cst_28 : f32 to vector<128x1xf32>
      %49 = arith.select %45, %47, %48 : vector<128x1xi1>, vector<128x1xf32>
      %c0_29 = arith.constant 0 : index
      %c0_30 = arith.constant 0 : index
      %50 = vector.load %arg6[%c0_29, %c0_30] : memref<128x1xf32, #tpu.memory_space<vmem>>, vector<128x1xf32>
      tpu.vector_store %arg6[%c0_29, %c0_30], %49 {strides = array<i32>} : memref<128x1xf32, #tpu.memory_space<vmem>>, vector<128x1xf32>,
    } else {
    }
    return
  }
  func.func @transform_0(%arg0: i32, %arg1: i32) -> (i32, i32) {
    %c0_i32 = arith.constant 0 : i32
    %c0_i32_0 = arith.constant 0 : i32
    return %arg0, %c0_i32 : i32, i32
  }
  func.func @transform_1(%arg0: i32, %arg1: i32) -> (i32, i32) {
    %c0_i32 = arith.constant 0 : i32
    %c0_i32_0 = arith.constant 0 : i32
    return %c0_i32, %arg1 : i32, i32
  }
  func.func @transform_2(%arg0: i32, %arg1: i32) -> (i32, i32) {
    %c0_i32 = arith.constant 0 : i32
    %c0_i32_0 = arith.constant 0 : i32
    return %arg0, %c0_i32 : i32, i32
  }
  func.func @transform_3(%arg0: i32, %arg1: i32) -> (i32, i32) {
    %c0_i32 = arith.constant 0 : i32
    %c0_i32_0 = arith.constant 0 : i32
    return %c0_i32, %arg1 : i32, i32
  }
  func.func @transform_4(%arg0: i32, %arg1: i32) -> (i32, i32) {
    %c0_i32 = arith.constant 0 : i32
    %c0_i32_0 = arith.constant 0 : i32
    return %arg0, %c0_i32 : i32, i32
  }
}

</mosaic_0001>

<bundles_post_ra>
// kernel: tpu_custom_call.1
= control target key start
LH: loop header
LB: loop body
LE: loop exit
PB: predicated region body
PF: predicated region fallthrough
CT: control target
= control target key end

     0   :  { %9 = vsyncpa [#allocation6], 0  ;;  %s1548_s18 = smov [#allocation5]   ;;  %s1549_s20 = smov 128   ;;  %s2664_s0 = inlined_call_operand.vmem [shape: f32[128,128], index: 0, kind: input, shape index: {}]   ;;  %s2665_s1 = inlined_call_operand.hbm [shape: f32[128,128], index: 1, kind: input, shape index: {}]   ;;  %s2666_s2 = inlined_call_operand.vmem [shape: s32[128,1], index: 2, kind: input, shape index: {}]   ;;  %s2667_s3 = inlined_call_operand.vmem [shape: s32[1,128], index: 3, kind: input, shape index: {}]   ;;  %s2668_s4 = inlined_call_operand.vmem [shape: f32[128,1], index: 4, kind: output, shape index: {}]  }
   0x1   :  { %s16_s17 = sshll.u32 %s2665_s1, 4  ;;  %s18_s19 = sshll.u32 %s1548_s18, 4  ;;  %s17_s17 = int_to_ptr.hbm [resolvable:$true] %s16_s17  ;;  %s19_s19 = int_to_ptr.vmem [resolvable:$true] %s18_s19 }
   0x2   :  { %s1550_s21 = smov 8  }
   0x3   :  { %24 = dma.hbm_to_vmem [thread:$0]  %s17_s17, 2048, %s19_s19, [#allocation6], %s1549_s20, %s1549_s20, %s1550_s21  }
   0x4   :  { %1546 = dma.done.wait [#allocation6], 2048  }
   0x5   :  { %1547 = vsyncadd [#allocation6], 4294965248  ;;  %v1551_v0 = vmov 0   ;;  %v184_v1 = vld [vmem:[%s2666_s2 + $0x10] sm:$0xff]  ;;  %v182_v2 = vld [vmem:[%s2666_s2] sm:$0xff]  ;;  %v308_v49 = vlaneseq  ;;  %v2677_v55 = vmov 0 }
   0x6   :  { %1423 = vset.pattern.permute.xlu1 %v1551_v0  ;;  %1422 = vset.pattern.permute.xlu0 %v1551_v0  ;;  %v116_v3 = vld [vmem:[#allocation5 + $0x78] sm:$0xff]  ;;  %v115_v4 = vld [vmem:[#allocation5 + $0x70] sm:$0xff]  ;;  %v114_v5 = vld [vmem:[#allocation5 + $0x68] sm:$0xff]  ;;  %v1552_v61 = vmov 0.0  }
   0x7   :  { %1424 = vset.pattern.permute.xlu2 %v1551_v0  ;;  %206 = vperm.xlu1 %1423, %v184_v1   ;;  %v113_v6 = vld [vmem:[#allocation5 + $0x60] sm:$0xff]  ;;  %v185_v8 = vld [vmem:[%s2666_s2 + $0x18] sm:$0xff]  ;;  %v183_v9 = vld [vmem:[%s2666_s2 + $0x8] sm:$0xff]  ;;  %v1677_v50 = vshrl.u32 %v308_v49, 7  ;;  %v1680_v52 = vand.u32 127, %v308_v49 }
   0x8   :  { %200 = vperm.xlu0 %1422, %v182_v2   ;;  %117 = vmatpush.msra.mxu0 %v116_v3  ;;  %v186_v7 = vld [vmem:[%s2666_s2 + $0x20] sm:$0xff]  ;;  %v112_v10 = vld [vmem:[#allocation5 + $0x58] sm:$0xff]  ;;  %v111_v11 = vld [vmem:[#allocation5 + $0x50] sm:$0xff] }
   0x9   :  { %1369 = vmatpush.msra.mxu1 %v116_v3  ;;  %1370 = vmatpush.msra.mxu2 %v116_v3  ;;  %v110_v12 = vld [vmem:[#allocation5 + $0x48] sm:$0xff]  ;;  %v109_v13 = vld [vmem:[#allocation5 + $0x40] sm:$0xff]  ;;  %v189_v15 = vld [vmem:[%s2666_s2 + $0x38] sm:$0xff]  ;;  %v311_v51 = vadd.s32 16, %v1677_v50  ;;  %vm2674_vm1 = vcmp.lt.s32.totalorder %v1680_v52, 16  ;;  %vm346_vm2 = vcmp.ne.s32.totalorder %v1677_v50, %v1680_v52  ;;  %v313_v54 = vadd.s32 32, %v1677_v50 }
   0xa   :  { %1371 = vmatpush.msra.mxu3 %v116_v3  ;;  %118 = vmatpush.msra.mxu0 %v115_v4  ;;  %v187_v14 = vld [vmem:[%s2666_s2 + $0x28] sm:$0xff]  ;;  %v188_v16 = vld [vmem:[%s2666_s2 + $0x30] sm:$0xff]  ;;  %v108_v17 = vld [vmem:[#allocation5 + $0x38] sm:$0xff]  ;;  %v310_v59 = vadd.s32 8, %v1677_v50  ;;  %v312_v1 = vadd.s32 24, %v1677_v50 }
   0xb   :  { %1372 = vmatpush.msra.mxu1 %v115_v4  ;;  %1373 = vmatpush.msra.mxu2 %v115_v4  ;;  %v107_v18 = vld [vmem:[#allocation5 + $0x30] sm:$0xff]  ;;  %v106_v19 = vld [vmem:[#allocation5 + $0x28] sm:$0xff]  ;;  %v105_v20 = vld [vmem:[#allocation5 + $0x20] sm:$0xff]  ;;  %vm348_vm0 = vcmp.ne.s32.totalorder %v311_v51, %v1680_v52  ;;  %vm350_vm7 = vcmp.ne.s32.totalorder %v313_v54, %v1680_v52 }
   0xc   :  { %1374 = vmatpush.msra.mxu3 %v115_v4  ;;  %119 = vmatpush.msra.mxu0 %v114_v5  ;;  %v190_v21 = vld [vmem:[%s2666_s2 + $0x40] sm:$0xff]  ;;  %v192_v22 = vld [vmem:[%s2666_s2 + $0x50] sm:$0xff]  ;;  %v191_v23 = vld [vmem:[%s2666_s2 + $0x48] sm:$0xff]  ;;  %vm347_vm12 = vcmp.ne.s32.totalorder %v310_v59, %v1680_v52 }
   0xd   :  { %1375 = vmatpush.msra.mxu1 %v114_v5  ;;  %1376 = vmatpush.msra.mxu2 %v114_v5  ;;  %v104_v24 = vld [vmem:[#allocation5 + $0x18] sm:$0xff]  ;;  %v103_v25 = vld [vmem:[#allocation5 + $0x10] sm:$0xff]  ;;  %v102_v26 = vld [vmem:[#allocation5 + $0x8] sm:$0xff] }
   0xe   :  { %1377 = vmatpush.msra.mxu3 %v114_v5  ;;  %120 = vmatpush.msra.mxu0 %v113_v6  ;;  %v101_v27 = vld [vmem:[#allocation5] sm:$0xff]  ;;  %v193_v32 = vld [vmem:[%s2666_s2 + $0x58] sm:$0xff]  ;;  %v195_v33 = vld [vmem:[%s2666_s2 + $0x68] sm:$0xff] }
   0xf   :  { %1378 = vmatpush.msra.mxu1 %v113_v6  ;;  %1379 = vmatpush.msra.mxu2 %v113_v6  ;;  %v85_v28 = vld [vmem:[%s2664_s0] sm:$0xff]  ;;  %v86_v35 = vld [vmem:[%s2664_s0 + $0x8] sm:$0xff]  ;;  %v196_v39 = vld [vmem:[%s2666_s2 + $0x70] sm:$0xff] }
  0x10   :  { %1380 = vmatpush.msra.mxu3 %v113_v6  ;;  %212 = vperm.xlu2 %1424, %v186_v7   ;;  %v89_v29 = vld [vmem:[%s2664_s0 + $0x20] sm:$0xff]  ;;  %v90_v36 = vld [vmem:[%s2664_s0 + $0x28] sm:$0xff]  ;;  %v197_v40 = vld [vmem:[%s2666_s2 + $0x78] sm:$0xff]  ;;  %v316_v6 = vadd.s32 56, %v1677_v50  ;;  %v315_v7 = vadd.s32 48, %v1677_v50 }
  0x11   :  { %209 = vperm.xlu1 %1423, %v185_v8   ;;  %203 = vperm.xlu0 %1422, %v183_v9   ;;  %v93_v30 = vld [vmem:[%s2664_s0 + $0x40] sm:$0xff]  ;;  %v94_v37 = vld [vmem:[%s2664_s0 + $0x48] sm:$0xff]  ;;  %v87_v41 = vld [vmem:[%s2664_s0 + $0x10] sm:$0xff] }
  0x12   :  { %121 = vmatpush.msra.mxu0 %v112_v10  ;;  %1381 = vmatpush.msra.mxu1 %v112_v10  ;;  %v97_v31 = vld [vmem:[%s2664_s0 + $0x60] sm:$0xff]  ;;  %v98_v38 = vld [vmem:[%s2664_s0 + $0x68] sm:$0xff]  ;;  %v91_v42 = vld [vmem:[%s2664_s0 + $0x30] sm:$0xff] }
  0x13   :  { %1382 = vmatpush.msra.mxu2 %v112_v10  ;;  %1383 = vmatpush.msra.mxu3 %v112_v10  ;;  %v194_v34 = vld [vmem:[%s2666_s2 + $0x60] sm:$0xff]  ;;  %v95_v43 = vld [vmem:[%s2664_s0 + $0x50] sm:$0xff]  ;;  %v88_v45 = vld [vmem:[%s2664_s0 + $0x18] sm:$0xff]  ;;  %v2685_v10 = vmov 0 }
  0x14   :  { %122 = vmatpush.msra.mxu0 %v111_v11  ;;  %1384 = vmatpush.msra.mxu1 %v111_v11  ;;  %v99_v44 = vld [vmem:[%s2664_s0 + $0x70] sm:$0xff]  ;;  %v92_v46 = vld [vmem:[%s2664_s0 + $0x38] sm:$0xff]  ;;  %v1687_v53 = vld [vmem:[%s2667_s3] ss:$0 sm:$0xff] }
  0x15   :  { %1385 = vmatpush.msra.mxu2 %v111_v11  ;;  %1386 = vmatpush.msra.mxu3 %v111_v11  ;;  %v96_v47 = vld [vmem:[%s2664_s0 + $0x58] sm:$0xff]  ;;  %vm1694_vm3 = vmand %vm348_vm0, %vm2674_vm1  ;;  %v314_v11 = vadd.s32 40, %v1677_v50 }
  0x16   :  { %123 = vmatpush.msra.mxu0 %v110_v12  ;;  %1387 = vmatpush.msra.mxu1 %v110_v12  ;;  %v100_v48 = vld [vmem:[%s2664_s0 + $0x78] sm:$0xff]  ;;  %v2678_v55 = vsel %vm1694_vm3, 4294967295, %v2677_v55  ;;  %vm1700_vm4 = vmand %vm346_vm2, %vm2674_vm1  ;;  %vm349_vm2 = vcmp.ne.s32.totalorder %v312_v1, %v1680_v52 }
  0x17   :  { %1388 = vmatpush.msra.mxu2 %v110_v12  ;;  %1389 = vmatpush.msra.mxu3 %v110_v12  ;;  %vm1722_vm11 = vmand %vm350_vm7, %vm2674_vm1  ;;  %v2687_v12 = vmov 0 }
  0x18   :  { %124 = vmatpush.msra.mxu0 %v109_v13  ;;  %1390 = vmatpush.msra.mxu1 %v109_v13  ;;  %vm1733_vm14 = vmand %vm347_vm12, %vm2674_vm1 }
  0x19   :  { %1391 = vmatpush.msra.mxu2 %v109_v13  ;;  %1392 = vmatpush.msra.mxu3 %v109_v13  ;;  %vm1755_vm7 = vmand %vm349_vm2, %vm2674_vm1 }
  0x1a   :  { %215 = vperm.xlu2 %1424, %v187_v14   ;;  %221 = vperm.xlu1 %1423, %v189_v15   ;;  %v2686_v10 = vsel %vm1755_vm7, 4294967295, %v2685_v10  ;;  %v2689_v15 = vmov 0 }
  0x1b   :  { %218 = vperm.xlu0 %1422, %v188_v16   ;;  %125 = vmatpush.msra.mxu0 %v108_v17  ;;  %v319_v16 = vadd.s32 80, %v1677_v50 }
  0x1c   :  { %1393 = vmatpush.msra.mxu1 %v108_v17  ;;  %1394 = vmatpush.msra.mxu2 %v108_v17 }
  0x1d   :  { %1395 = vmatpush.msra.mxu3 %v108_v17  ;;  %126 = vmatpush.msra.mxu0 %v107_v18 }
  0x1e   :  { %1396 = vmatpush.msra.mxu1 %v107_v18  ;;  %1397 = vmatpush.msra.mxu2 %v107_v18 }
  0x1f   :  { %1398 = vmatpush.msra.mxu3 %v107_v18  ;;  %127 = vmatpush.msra.mxu0 %v106_v19  ;;  %v318_v18 = vadd.s32 72, %v1677_v50 }
  0x20   :  { %1399 = vmatpush.msra.mxu1 %v106_v19  ;;  %1400 = vmatpush.msra.mxu2 %v106_v19 }
  0x21   :  { %1401 = vmatpush.msra.mxu3 %v106_v19  ;;  %128 = vmatpush.msra.mxu0 %v105_v20 }
  0x22   :  { %1402 = vmatpush.msra.mxu1 %v105_v20  ;;  %1403 = vmatpush.msra.mxu2 %v105_v20 }
  0x23   :  { %1404 = vmatpush.msra.mxu3 %v105_v20  ;;  %224 = vperm.xlu2 %1424, %v190_v21   ;;  %v317_v20 = vadd.s32 64, %v1677_v50 }
  0x24   :  { %230 = vperm.xlu1 %1423, %v192_v22   ;;  %227 = vperm.xlu0 %1422, %v191_v23  }
  0x25   :  { %129 = vmatpush.msra.mxu0 %v104_v24  ;;  %1405 = vmatpush.msra.mxu1 %v104_v24 }
  0x26   :  { %1406 = vmatpush.msra.mxu2 %v104_v24  ;;  %1407 = vmatpush.msra.mxu3 %v104_v24  ;;  %v2693_v24 = vmov 0 }
  0x27   :  { %130 = vmatpush.msra.mxu0 %v103_v25  ;;  %1408 = vmatpush.msra.mxu1 %v103_v25 }
  0x28   :  { %1409 = vmatpush.msra.mxu2 %v103_v25  ;;  %1410 = vmatpush.msra.mxu3 %v103_v25 }
  0x29   :  { %131 = vmatpush.msra.mxu0 %v102_v26  ;;  %1411 = vmatpush.msra.mxu1 %v102_v26 }
  0x2a   :  { %1412 = vmatpush.msra.mxu2 %v102_v26  ;;  %1413 = vmatpush.msra.mxu3 %v102_v26  ;;  %v2695_v26 = vmov 0 }
  0x2b   :  { %132 = vmatpush.msra.mxu0 %v101_v27  ;;  %1414 = vmatpush.msra.mxu1 %v101_v27 }
  0x2c   :  { %1415 = vmatpush.msra.mxu2 %v101_v27  ;;  %1416 = vmatpush.msra.mxu3 %v101_v27 }
  0x2d   :  { %133 = vmatmul.f32.vlgmr.msra.gmra.mxu0 %v85_v28  ;;  %145 = vmatmul.f32.vlgmr.msra.gmra.mxu1 %v89_v29 }
  0x2e   :  { %157 = vmatmul.f32.vlgmr.msra.gmra.mxu2 %v93_v30  ;;  %169 = vmatmul.f32.vlgmr.msra.gmra.mxu3 %v97_v31  ;;  %v320_v31 = vadd.s32 88, %v1677_v50 }
  0x2f   :  { %233 = vperm.xlu2 %1424, %v193_v32   ;;  %239 = vperm.xlu1 %1423, %v195_v33   ;;  %v322_v33 = vadd.s32 104, %v1677_v50 }
  0x30   :  { %236 = vperm.xlu0 %1422, %v194_v34  }
  0x35   :  { %136 = vmatmul.f32.gmra.mxu0 %v86_v35  ;;  %148 = vmatmul.f32.gmra.mxu1 %v90_v36  ;;  %v321_v35 = vadd.s32 96, %v1677_v50 }
  0x36   :  { %160 = vmatmul.f32.gmra.mxu2 %v94_v37  ;;  %172 = vmatmul.f32.gmra.mxu3 %v98_v38  ;;  %v2699_v37 = vmov 0 }
  0x37   :  { %242 = vperm.xlu2 %1424, %v196_v39   ;;  %v323_v39 = vadd.s32 112, %v1677_v50 }
  0x38   :  { %245 = vperm.xlu0 %1422, %v197_v40  }
  0x3d   :  { %139 = vmatmul.f32.gmra.mxu0 %v87_v41  ;;  %151 = vmatmul.f32.gmra.mxu1 %v91_v42 }
  0x3e   :  { %163 = vmatmul.f32.gmra.mxu2 %v95_v43  ;;  %175 = vmatmul.f32.gmra.mxu3 %v99_v44  ;;  %v324_v43 = vadd.s32 120, %v1677_v50 }
  0x45   :  { %142 = vmatmul.f32.gmra.mxu0 %v88_v45  ;;  %154 = vmatmul.f32.gmra.mxu1 %v92_v46 }
  0x46   :  { %166 = vmatmul.f32.gmra.mxu2 %v96_v47  ;;  %178 = vmatmul.f32.gmra.mxu3 %v100_v48 }
  0x6a   :  { %v213_v60 = vpop.permute.xlu2 %212 }
  0x6b   :  { %vm252_vm10 = vcmp.eq.s32.totalorder %v213_v60, %v1687_v53 }
  0x6c   :  { %vm385_vm13 = vmand %vm252_vm10, %vm1722_vm11 }
  0x6d   :  { %v1738_v5 = vsel %vm385_vm13, 1.0, %v1552_v61 }
  0x74   :  { %v216_v8 = vpop.permute.xlu2 %215 }
  0x79   :  { %v207_v56 = vpop.permute.xlu1 %206 }
  0x7a   :  { %v201_v57 = vpop.permute.xlu0 %200  ;;  %vm250_vm5 = vcmp.eq.s32.totalorder %v207_v56, %v1687_v53 }
  0x7b   :  { %vm248_vm6 = vcmp.eq.s32.totalorder %v201_v57, %v1687_v53  ;;  %vm383_vm8 = vmand %vm250_vm5, %vm1694_vm3  ;;  %vm353_vm5 = vcmp.ne.s32.totalorder %v316_v6, %v1680_v52  ;;  %vm361_vm3 = vcmp.ne.s32.totalorder %v324_v43, %v1680_v52 }
  0x7c   :  { %v1711_v62 = vsel %vm383_vm8, 1.0, %v1552_v61  ;;  %vm381_vm9 = vmand %vm248_vm6, %vm1700_vm4  ;;  %vm352_vm8 = vcmp.ne.s32.totalorder %v315_v7, %v1680_v52 }
  0x7d   :  { %823 = vadd.xlane.f32.xlu0 %v1711_v62  ;;  %v1718_v63 = vsel %vm381_vm9, 1.0, %v1552_v61  ;;  %vm1763_vm9 = vmand %vm353_vm5, %vm2674_vm1  ;;  %v225_v21 = vpop.permute.xlu2 %224 }
  0x7e   :  { %819 = vadd.xlane.f32.xlu1 %v1718_v63  ;;  %v2688_v12 = vsel %vm1763_vm9, 4294967295, %v2687_v12  ;;  %vm1771_vm12 = vmand %vm352_vm8, %vm2674_vm1 }
  0x7f   :  { %v2690_v15 = vsel %vm1771_vm12, 4294967295, %v2689_v15 }
  0x83   :  { %v210_v2 = vpop.permute.xlu1 %209  ;;  %v204_v4 = vpop.permute.xlu0 %203 }
  0x84   :  { %vm249_vm15 = vcmp.eq.s32.totalorder %v204_v4, %v1687_v53  ;;  %vm251_vm6 = vcmp.eq.s32.totalorder %v210_v2, %v1687_v53 }
  0x85   :  { %vm382_vm0 = vmand %vm249_vm15, %vm1733_vm14 }
  0x86   :  { %827 = vadd.xlane.f32.xlu1 %v1738_v5  ;;  %v1748_v9 = vsel %vm382_vm0, 1.0, %v1552_v61  ;;  %vm384_vm10 = vmand %vm251_vm6, %vm1755_vm7  ;;  %vm351_vm0 = vcmp.ne.s32.totalorder %v314_v11, %v1680_v52  ;;  %vm253_vm6 = vcmp.eq.s32.totalorder %v216_v8, %v1687_v53  ;;  %vm256_vm7 = vcmp.eq.s32.totalorder %v225_v21, %v1687_v53 }
  0x87   :  { %821 = vadd.xlane.f32.xlu2 %v1748_v9  ;;  %v1782_v17 = vsel %vm384_vm10, 1.0, %v1552_v61  ;;  %vm1799_vm8 = vmand %vm351_vm0, %vm2674_vm1  ;;  %vm356_vm10 = vcmp.ne.s32.totalorder %v319_v16, %v1680_v52 }
  0x89   :  { %v234_v34 = vpop.permute.xlu2 %233 }
  0x8c   :  { %v222_v13 = vpop.permute.xlu1 %221 }
  0x8d   :  { %v219_v14 = vpop.permute.xlu0 %218  ;;  %vm255_vm13 = vcmp.eq.s32.totalorder %v222_v13, %v1687_v53 }
  0x8e   :  { %vm254_vm15 = vcmp.eq.s32.totalorder %v219_v14, %v1687_v53  ;;  %vm388_vm2 = vmand %vm255_vm13, %vm1763_vm9  ;;  %vm355_vm13 = vcmp.ne.s32.totalorder %v318_v18, %v1680_v52 }
  0x8f   :  { %v1786_v19 = vsel %vm388_vm2, 1.0, %v1552_v61  ;;  %825 = vadd.xlane.f32.xlu2 %v1782_v17  ;;  %vm387_vm5 = vmand %vm254_vm15, %vm1771_vm12  ;;  %vm354_vm2 = vcmp.ne.s32.totalorder %v317_v20, %v1680_v52 }
  0x90   :  { %833 = vadd.xlane.f32.xlu1 %v1786_v19  ;;  %v1795_v22 = vsel %vm387_vm5, 1.0, %v1552_v61  ;;  %vm386_vm15 = vmand %vm253_vm6, %vm1799_vm8 }
  0x91   :  { %831 = vadd.xlane.f32.xlu0 %v1795_v22  ;;  %vm1811_vm5 = vmand %vm356_vm10, %vm2674_vm1  ;;  %v1823_v28 = vsel %vm386_vm15, 1.0, %v1552_v61  ;;  %v243_v44 = vpop.permute.xlu2 %242 }
  0x92   :  { %v2694_v24 = vsel %vm1811_vm5, 4294967295, %v2693_v24  ;;  %vm1817_vm0 = vmand %vm355_vm13, %vm2674_vm1 }
  0x93   :  { %v2696_v26 = vsel %vm1817_vm0, 4294967295, %v2695_v26  ;;  %vm1827_vm6 = vmand %vm354_vm2, %vm2674_vm1  ;;  %vm357_vm2 = vcmp.ne.s32.totalorder %v320_v31, %v1680_v52 }
  0x96   :  { %v231_v25 = vpop.permute.xlu1 %230  ;;  %v228_v27 = vpop.permute.xlu0 %227 }
  0x97   :  { %vm258_vm9 = vcmp.eq.s32.totalorder %v231_v25, %v1687_v53  ;;  %vm257_vm10 = vcmp.eq.s32.totalorder %v228_v27, %v1687_v53  ;;  %829 = vadd.xlane.f32.xlu2 %v1823_v28 }
  0x98   :  { %vm391_vm13 = vmand %vm258_vm9, %vm1811_vm5 }
  0x99   :  { %v1837_v30 = vsel %vm391_vm13, 1.0, %v1552_v61  ;;  %vm390_vm15 = vmand %vm257_vm10, %vm1817_vm0  ;;  %vm359_vm10 = vcmp.ne.s32.totalorder %v322_v33, %v1680_v52  ;;  %vm358_vm13 = vcmp.ne.s32.totalorder %v321_v35, %v1680_v52 }
  0x9a   :  { %839 = vadd.xlane.f32.xlu1 %v1837_v30  ;;  %v1844_v32 = vsel %vm390_vm15, 1.0, %v1552_v61  ;;  %vm389_vm9 = vmand %vm256_vm7, %vm1827_vm6  ;;  %vm259_vm15 = vcmp.eq.s32.totalorder %v234_v34, %v1687_v53 }
  0x9b   :  { %837 = vadd.xlane.f32.xlu0 %v1844_v32  ;;  %v1345_v36 = vsel %vm389_vm9, 1.0, %v1552_v61  ;;  %vm1858_vm5 = vmand %vm357_vm2, %vm2674_vm1 }
  0x9c   :  { %v2700_v37 = vsel %vm1858_vm5, 4294967295, %v2699_v37  ;;  %vm1864_vm7 = vmand %vm359_vm10, %vm2674_vm1 }
  0x9d   :  { %vm1871_vm9 = vmand %vm358_vm13, %vm2674_vm1  ;;  %vm360_vm1 = vcmp.ne.s32.totalorder %v323_v39, %v1680_v52 }
  0x9e   :  { %vm392_vm10 = vmand %vm259_vm15, %vm1858_vm5 }
  0x9f   :  { %835 = vadd.xlane.f32.xlu2 %v1345_v36  ;;  %v1895_v47 = vsel %vm392_vm10, 1.0, %v1552_v61 }
  0xa1   :  { %v240_v40 = vpop.permute.xlu1 %239 }
  0xa2   :  { %v237_v41 = vpop.permute.xlu0 %236  ;;  %vm261_vm2 = vcmp.eq.s32.totalorder %v240_v40, %v1687_v53 }
  0xa3   :  { %vm260_vm12 = vcmp.eq.s32.totalorder %v237_v41, %v1687_v53  ;;  %vm394_vm0 = vmand %vm261_vm2, %vm1864_vm7 }
  0xa4   :  { %v1883_v45 = vsel %vm394_vm0, 1.0, %v1552_v61  ;;  %vm393_vm13 = vmand %vm260_vm12, %vm1871_vm9  ;;  %vm262_vm0 = vcmp.eq.s32.totalorder %v243_v44, %v1687_v53  ;;  %vm2705_vm12 = vcmp.lt.s32.totalorder %v1680_v52, 16 }
  0xa5   :  { %845 = vadd.xlane.f32.xlu1 %v1883_v45  ;;  %v1890_v46 = vsel %vm393_vm13, 1.0, %v1552_v61  ;;  %vm1901_vm15 = vmand %vm360_vm1, %vm2705_vm12 }
  0xa6   :  { %843 = vadd.xlane.f32.xlu0 %v1890_v46  ;;  %vm2708_vm2 = vmmov %vm2705_vm12 }
  0xa7   :  { %841 = vadd.xlane.f32.xlu2 %v1895_v47  ;;  %vm1907_vm13 = vmand %vm361_vm3, %vm2708_vm2  ;;  %vm2711_vm3 = vnez %v2678_v55 }
  0xa8   :  { %vm395_vm5 = vmand %vm262_vm0, %vm1901_vm15 }
  0xa9   :  { %v1921_v52 = vsel %vm395_vm5, 1.0, %v1552_v61  ;;  %vm2716_vm5 = vnez %v2694_v24 }
  0xaa   :  { %v246_v50 = vpop.permute.xlu0 %245  ;;  %v134_v51 = vpop.f32.mrf.mxu0 }
  0xab   :  { %vm263_vm10 = vcmp.eq.s32.totalorder %v246_v50, %v1687_v53  ;;  %v264_v54 = vmul.f32 1.442695, %v134_v51  ;;  %v146_v57 = vpop.f32.mrf.mxu1  ;;  %v557_v4 = vmul.f32 %v1718_v63, %v134_v51 }
  0xac   :  { %vm396_vm1 = vmand %vm263_vm10, %vm1907_vm13  ;;  %v272_v59 = vmul.f32 1.442695, %v146_v57  ;;  %v561_v1 = vmul.f32 %v1738_v5, %v146_v57 }
  0xad   :  { %v1917_v56 = vsel %vm396_vm1, 1.0, %v1552_v61  ;;  %1426 = vpow2.f32 %v264_v54 }
  0xae   :  { %849 = vadd.xlane.f32.xlu0 %v1917_v56  ;;  %1428 = vpow2.f32 %v272_v59 }
  0xaf   :  { %847 = vadd.xlane.f32.xlu2 %v1921_v52 }
  0xb1   :  { %v158_v53 = vpop.f32.mrf.mxu2  ;;  %v1928_v11 = vpop.f32.mrf.mxu3 }
  0xb2   :  { %v565_v60 = vmul.f32 %v1345_v36, %v158_v53  ;;  %v280_v6 = vmul.f32 1.442695, %v158_v53  ;;  %v137_v8 = vpop.f32.mrf.mxu0  ;;  %v288_v13 = vmul.f32 1.442695, %v1928_v11 }
  0xb3   :  { %v1427_v2 = vpop.eup %1426  ;;  %v558_v14 = vmul.f32 %v1748_v9, %v137_v8  ;;  %v149_v63 = vpop.f32.mrf.mxu1  ;;  %v266_v18 = vmul.f32 1.442695, %v137_v8 }
  0xb4   :  { %931 = vadd.xlane.f32.xlu1 %v565_v60  ;;  %v429_v61 = vsel %vm1700_vm4, %v1427_v2, 0.0  ;;  %v1429_v7 = vpop.eup %1428  ;;  %1430 = vpow2.f32 %v280_v6  ;;  %v274_v16 = vmul.f32 1.442695, %v149_v63  ;;  %v562_v20 = vmul.f32 %v1823_v28, %v149_v63 }
  0xb5   :  { %v433_v5 = vsel %vm1722_vm11, %v1429_v7, 0.0  ;;  %1432 = vpow2.f32 %v288_v13  ;;  %vm2712_vm4 = vnez %v2696_v26  ;;  %vm2713_vm11 = vnez %v2690_v15 }
  0xb6   :  { %923 = vadd.xlane.f32.xlu0 %v561_v1  ;;  %1434 = vpow2.f32 %v274_v16 }
  0xb7   :  { %915 = vadd.xlane.f32.xlu2 %v557_v4  ;;  %1436 = vpow2.f32 %v266_v18 }
  0xb9   :  { %v161_v21 = vpop.f32.mrf.mxu2  ;;  %v1940_v28 = vpop.f32.mrf.mxu3 }
  0xba   :  { %v1431_v58 = vpop.eup %1430  ;;  %v140_v27 = vpop.f32.mrf.mxu0  ;;  %v566_v0 = vmul.f32 %v1844_v32, %v161_v21  ;;  %v282_v39 = vmul.f32 1.442695, %v161_v21  ;;  %v290_v32 = vmul.f32 1.442695, %v1940_v28  ;;  %v570_v49 = vmul.f32 %v1883_v45, %v1940_v28 }
  0xbb   :  { %v437_v25 = vsel %vm1827_vm6, %v1431_v58, 0.0  ;;  %v1433_v9 = vpop.eup %1432  ;;  %v268_v31 = vmul.f32 1.442695, %v140_v27  ;;  %v152_v40 = vpop.f32.mrf.mxu1  ;;  %v559_v42 = vmul.f32 %v1711_v62, %v140_v27  ;;  %vm2717_vm6 = vnez %v2688_v12 }
  0xbc   :  { %867 = vadd.xlane.f32.xlu1 %v429_v61  ;;  %v1435_v33 = vpop.eup %1434  ;;  %v441_v34 = vsel %vm1871_vm9, %v1433_v9, 0.0  ;;  %v276_v43 = vmul.f32 1.442695, %v152_v40  ;;  %v563_v3 = vmul.f32 %v1795_v22, %v152_v40 }
  0xbd   :  { %v1437_v35 = vpop.eup %1436  ;;  %1438 = vpow2.f32 %v268_v31  ;;  %v434_v29 = vsel %vm1799_vm8, %v1435_v33, 0.0  ;;  %vm2715_vm8 = vnez %v2700_v37 }
  0xbe   :  { %917 = vadd.xlane.f32.xlu0 %v558_v14  ;;  %v430_v36 = vsel %vm1733_vm14, %v1437_v35, 0.0  ;;  %1440 = vpow2.f32 %v282_v39  ;;  %vm2714_vm14 = vnez %v2686_v10 }
  0xbf   :  { %875 = vadd.xlane.f32.xlu2 %v433_v5  ;;  %1442 = vpow2.f32 %v290_v32 }
  0xc0   :  { %1444 = vpow2.f32 %v276_v43 }
  0xc1   :  { %v164_v44 = vpop.f32.mrf.mxu2  ;;  %v1950_v50 = vpop.f32.mrf.mxu3 }
  0xc2   :  { %v292_v51 = vmul.f32 1.442695, %v1950_v50  ;;  %v143_v62 = vpop.f32.mrf.mxu0  ;;  %v284_v6 = vmul.f32 1.442695, %v164_v44  ;;  %v567_v10 = vmul.f32 %v1837_v30, %v164_v44  ;;  %v569_v30 = vmul.f32 %v1890_v46, %v1928_v11 }
  0xc3   :  { %v1439_v41 = vpop.eup %1438  ;;  %v155_v59 = vpop.f32.mrf.mxu1  ;;  %v270_v60 = vmul.f32 1.442695, %v143_v62  ;;  %v560_v13 = vmul.f32 %v1782_v17, %v143_v62  ;;  %v571_v12 = vmul.f32 %v1921_v52, %v1950_v50 }
  0xc4   :  { %925 = vadd.xlane.f32.xlu1 %v562_v20  ;;  %v431_v23 = vsel %vm2711_vm3, %v1439_v41, 0.0  ;;  %v1441_v54 = vpop.eup %1440  ;;  %1446 = vpow2.f32 %v292_v51  ;;  %v564_v55 = vmul.f32 %v1786_v19, %v155_v59  ;;  %v278_v63 = vmul.f32 1.442695, %v155_v59 }
  0xc5   :  { %v1443_v57 = vpop.eup %1442  ;;  %v438_v53 = vsel %vm2712_vm4, %v1441_v54, 0.0  ;;  %1448 = vpow2.f32 %v270_v60 }
  0xc6   :  { %883 = vadd.xlane.f32.xlu0 %v437_v25  ;;  %v442_v22 = vsel %vm1864_vm7, %v1443_v57, 0.0  ;;  %v1445_v1 = vpop.eup %1444 }
  0xc7   :  { %933 = vadd.xlane.f32.xlu2 %v566_v0  ;;  %v435_v7 = vsel %vm2713_vm11, %v1445_v1, 0.0 }
  0xc9   :  { %v167_v2 = vpop.f32.mrf.mxu2  ;;  %v179_v26 = vpop.f32.mrf.mxu3 }
  0xca   :  { %v286_v4 = vmul.f32 1.442695, %v167_v2  ;;  %v1447_v61 = vpop.eup %1446  ;;  %v294_v8 = vmul.f32 1.442695, %v179_v26  ;;  %v568_v24 = vmul.f32 %v1895_v47, %v167_v2  ;;  %v572_v47 = vmul.f32 %v1917_v56, %v179_v26 }
  0xcb   :  { %v443_v19 = vsel %vm1901_vm15, %v1447_v61, 0.0  ;;  %v1449_v38 = vpop.eup %1448 }
  0xcc   :  { %891 = vadd.xlane.f32.xlu1 %v441_v34  ;;  %1450 = vpow2.f32 %v286_v4  ;;  %v432_v5 = vsel %vm2714_vm14, %v1449_v38, 0.0 }
  0xcd   :  { %1452 = vpow2.f32 %v284_v6 }
  0xce   :  { %877 = vadd.xlane.f32.xlu0 %v434_v29  ;;  %1454 = vpow2.f32 %v294_v8 }
  0xcf   :  { %869 = vadd.xlane.f32.xlu2 %v430_v36  ;;  %1456 = vpow2.f32 %v278_v63 }
  0xd2   :  { %v1451_v14 = vpop.eup %1450 }
  0xd3   :  { %v1453_v15 = vpop.eup %1452  ;;  %v440_v16 = vsel %vm2715_vm8, %v1451_v14, 0.0 }
  0xd4   :  { %919 = vadd.xlane.f32.xlu1 %v559_v42  ;;  %v439_v48 = vsel %vm2716_vm5, %v1453_v15, 0.0  ;;  %v1455_v18 = vpop.eup %1454 }
  0xd5   :  { %v444_v17 = vsel %vm1907_vm13, %v1455_v18, 0.0  ;;  %v1457_v58 = vpop.eup %1456 }
  0xd6   :  { %871 = vadd.xlane.f32.xlu0 %v431_v23  ;;  %v436_v37 = vsel %vm2717_vm6, %v1457_v58, 0.0  ;;  %vm1315_vm6 = vcmask 7168  }
  0xd7   :  { %927 = vadd.xlane.f32.xlu2 %v563_v3 }
  0xdc   :  { %885 = vadd.xlane.f32.xlu1 %v438_v53 }
  0xde   :  { %929 = vadd.xlane.f32.xlu0 %v564_v55 }
  0xdf   :  { %893 = vadd.xlane.f32.xlu2 %v442_v22 }
  0xe4   :  { %879 = vadd.xlane.f32.xlu1 %v435_v7 }
  0xe6   :  { %895 = vadd.xlane.f32.xlu0 %v443_v19 }
  0xe7   :  { %921 = vadd.xlane.f32.xlu2 %v560_v13 }
  0xec   :  { %873 = vadd.xlane.f32.xlu1 %v432_v5 }
  0xee   :  { %889 = vadd.xlane.f32.xlu0 %v440_v16 }
  0xef   :  { %887 = vadd.xlane.f32.xlu2 %v439_v48 }
  0xf0   :  { %v1982_v25 = vpop.xlane.xlu0 %823 }
  0xf1   :  { %v1973_v20 = vpop.xlane.xlu1 %819  ;;  %v2011_v56 = vmax.f32 %v1982_v25, 1.0 }
  0xf2   :  { %v1011_v52 = vmax.f32 %v1973_v20, 1.0  ;;  %vm1267_vm3 = vcmp.gt.f32.partialorder %v1973_v20, 0.0 }
  0xf3   :  { %v1066_v4 = vand.u32 2147483647, %v2011_v56  ;;  %v1068_v6 = vand.u32 2147483648, %v2011_v56  ;;  %vm1062_vm7 = vweird.f32 %v2011_v56 }
  0xf4   :  { %897 = vadd.xlane.f32.xlu1 %v444_v17  ;;  %1458 = vrcp.f32 %v1011_v52  ;;  %v1036_v1 = vand.u32 2147483647, %v1011_v52  ;;  %v1038_v2 = vand.u32 2147483648, %v1011_v52  ;;  %vm1032_vm9 = vweird.f32 %v1011_v52 }
  0xf5   :  { %1460 = vrcp.f32 %v2011_v56  ;;  %vm2075_vm15 = vcmp.eq.f32.partialorder %v1066_v4, 8.507059e+37  ;;  %v1069_v48 = vor.u32 1.1754944e-38, %v1068_v6 }
  0xf6   :  { %935 = vadd.xlane.f32.xlu0 %v567_v10  ;;  %vm2070_vm12 = vcmp.eq.f32.partialorder %v1036_v1, 8.507059e+37  ;;  %v1039_v15 = vor.u32 1.1754944e-38, %v1038_v2 }
  0xf7   :  { %881 = vadd.xlane.f32.xlu2 %v436_v37 }
  0xf9   :  { %v1986_v9 = vpop.xlane.xlu1 %827 }
  0xfa   :  { %v1978_v21 = vpop.xlane.xlu2 %821  ;;  %v2014_v28 = vmax.f32 %v1986_v9, 1.0  ;;  %v2024_v32 = vpop.eup %1458  ;;  %vm1271_vm8 = vcmp.gt.f32.partialorder %v1986_v9, 0.0 }
  0xfb   :  { %v2026_v40 = vpop.eup %1460  ;;  %v1028_v43 = vmul.f32 %v2024_v32, %v1011_v52  ;;  %v2041_v3 = vmax.f32 %v1978_v21, 1.0  ;;  %vm1033_vm0 = vweird.f32 %v2024_v32 }
  0xfc   :  { %937 = vadd.xlane.f32.xlu1 %v568_v24  ;;  %1462 = vrcp.f32 %v2014_v28  ;;  %v1058_v23 = vmul.f32 %v2026_v40, %v2011_v56  ;;  %v1096_v26 = vand.u32 2147483647, %v2014_v28  ;;  %v1098_v63 = vand.u32 2147483648, %v2014_v28  ;;  %vm2088_vm13 = vmor %vm1032_vm9, %vm1033_vm0 }
  0xfd   :  { %v1029_v57 = vsub.f32 1.0, %v1028_v43  ;;  %v1053_v58 = vand.u32 2147483648, %v2041_v3  ;;  %vm1063_vm2 = vweird.f32 %v2026_v40  ;;  %vm1092_vm10 = vweird.f32 %v2014_v28 }
  0xfe   :  { %941 = vadd.xlane.f32.xlu0 %v570_v49  ;;  %v1059_v59 = vsub.f32 1.0, %v1058_v23  ;;  %vm2095_vm1 = vcmp.eq.f32.partialorder %v1096_v26, 8.507059e+37  ;;  %vm2118_vm11 = vmor %vm1062_vm7, %vm1063_vm2  ;;  %vm1047_vm7 = vweird.f32 %v2041_v3 }
  0xff   :  { %939 = vadd.xlane.f32.xlu2 %v569_v30  ;;  %v1030_v55 = vmul.f32 %v2024_v32, %v1029_v57  ;;  %v2126_v2 = vor.u32 1.1754944e-38, %v1053_v58 }
 0x100   :  { %v1060_v7 = vmul.f32 %v2026_v40, %v1059_v59 }
 0x101   :  { %v1031_v38 = vadd.f32 %v2024_v32, %v1030_v55 }
 0x102   :  { %v1990_v27 = vpop.xlane.xlu2 %825  ;;  %v2034_v44 = vpop.eup %1462  ;;  %v1061_v10 = vadd.f32 %v2026_v40, %v1060_v7 }
 0x103   :  { %v1995_v45 = vpop.xlane.xlu1 %833  ;;  %v1088_v54 = vmul.f32 %v2034_v44, %v2014_v28  ;;  %v2080_v17 = vmax.f32 %v1990_v27, 1.0  ;;  %v1035_v52 = vsel %vm2088_vm13, %v2024_v32, %v1031_v38  ;;  %vm1093_vm4 = vweird.f32 %v2034_v44 }
 0x104   :  { %943 = vadd.xlane.f32.xlu1 %v571_v12  ;;  %v1993_v0 = vpop.xlane.xlu0 %831  ;;  %v1051_v12 = vand.u32 2147483647, %v2041_v3  ;;  %v2123_v55 = vmax.f32 %v1995_v45, 1.0  ;;  %v1065_v4 = vsel %vm2118_vm11, %v2026_v40, %v1061_v10  ;;  %v1040_v56 = vsel %vm2070_vm12, %v1039_v15, %v1035_v52  ;;  %vm2138_vm14 = vmor %vm1092_vm10, %vm1093_vm4 }
 0x105   :  { %v1089_v60 = vsub.f32 1.0, %v1088_v54  ;;  %v2111_v57 = vmax.f32 %v1993_v0, 1.0 }
 0x106   :  { %vm2217_vm2 = vcmp.eq.f32.partialorder %v1051_v12, 8.507059e+37 }
 0x107   :  { %945 = vadd.xlane.f32.xlu2 %v572_v47  ;;  %v1090_v13 = vmul.f32 %v2034_v44, %v1089_v60 }
 0x109   :  { %v1091_v43 = vadd.f32 %v2034_v44, %v1090_v13 }
 0x10a   :  { %v1997_v31 = vpop.xlane.xlu2 %829 }
 0x10b   :  { %v2050_v62 = vmax.f32 %v1997_v31, 1.0  ;;  %v1095_v28 = vsel %vm2138_vm14, %v2034_v44, %v1091_v43  ;;  %vm1268_vm14 = vcmp.gt.f32.partialorder %v1978_v21, 0.0 }
 0x10d   :  { %v2003_v33 = vpop.xlane.xlu1 %839  ;;  %v1111_v32 = vand.u32 2147483647, %v2050_v62 }
 0x10e   :  { %v1999_v46 = vpop.xlane.xlu0 %837  ;;  %v2158_v15 = vmax.f32 %v2003_v33, 1.0 }
 0x112   :  { %v2001_v11 = vpop.xlane.xlu2 %835 }
 0x113   :  { %v2029_v41 = vmax.f32 %v2001_v11, 1.0  ;;  %vm1275_vm4 = vcmp.gt.f32.partialorder %v2001_v11, 0.0 }
 0x115   :  { %1464 = vrcp.f32 %v2029_v41  ;;  %vm1152_vm0 = vweird.f32 %v2029_v41  ;;  %v1156_v43 = vand.u32 2147483647, %v2029_v41 }
 0x116   :  { %1466 = vrcp.f32 %v2041_v3 }
 0x118   :  { %v2016_v29 = vpop.xlane.xlu1 %845 }
 0x119   :  { %v2005_v34 = vpop.xlane.xlu0 %843 }
 0x11a   :  { %v2008_v35 = vpop.xlane.xlu2 %841 }
 0x11b   :  { %v2053_v22 = vpop.eup %1464 }
 0x11c   :  { %v1148_v19 = vmul.f32 %v2053_v22, %v2029_v41  ;;  %v2068_v14 = vpop.eup %1466  ;;  %vm1153_vm9 = vweird.f32 %v2053_v22 }
 0x11d   :  { %v1043_v54 = vmul.f32 %v2068_v14, %v2041_v3  ;;  %vm1048_vm5 = vweird.f32 %v2068_v14  ;;  %vm2189_vm12 = vmor %vm1152_vm0, %vm1153_vm9  ;;  %vm1077_vm9 = vweird.f32 %v2080_v17  ;;  %vm1269_vm0 = vcmp.gt.f32.partialorder %v1982_v25, 0.0 }
 0x11e   :  { %v1149_v47 = vsub.f32 1.0, %v1148_v19  ;;  %v2148_v19 = vmax.f32 %v1999_v46, 1.0  ;;  %vm2236_vm10 = vmor %vm1047_vm7, %vm1048_vm5  ;;  %vm1122_vm5 = vweird.f32 %v2111_v57  ;;  %vm1112_vm7 = vcmp.eq.f32.partialorder %v1111_v32, 8.507059e+37 }
 0x11f   :  { %v1044_v38 = vsub.f32 1.0, %v1043_v54 }
 0x121   :  { %v2019_v36 = vpop.xlane.xlu0 %849  ;;  %v1045_v52 = vmul.f32 %v2068_v14, %v1044_v38 }
 0x122   :  { %v2022_v39 = vpop.xlane.xlu2 %847 }
 0x127   :  { %v2031_v42 = vpop.xlane.xlu1 %931 }
 0x129   :  { %v2038_v50 = vpop.xlane.xlu0 %923 }
 0x12a   :  { %v2044_v51 = vpop.xlane.xlu2 %915 }
 0x12f   :  { %v868_v53 = vpop.xlane.xlu1 %867 }
 0x130   :  { %1468 = vlog2.f32 %v868_v53  ;;  %v1099_v53 = vor.u32 1.1754944e-38, %v1098_v63  ;;  %v2163_v63 = vsel %vm2075_vm15, %v1069_v48, %v1065_v4  ;;  %v1128_v4 = vand.u32 2147483648, %v2111_v57 }
 0x131   :  { %v2057_v61 = vpop.xlane.xlu0 %917  ;;  %1470 = vrcp.f32 %v2050_v62  ;;  %vm1157_vm15 = vcmp.eq.f32.partialorder %v1156_v43, 8.507059e+37 }
 0x132   :  { %v876_v8 = vpop.xlane.xlu2 %875 }
 0x133   :  { %1472 = vlog2.f32 %v876_v8 }
 0x134   :  { %1474 = vrcp.f32 %v2080_v17 }
 0x136   :  { %v1469_v18 = vpop.eup %1468 }
 0x137   :  { %v948_v37 = vmul.f32 0.6931472, %v1469_v18  ;;  %v2092_v49 = vpop.xlane.xlu1 %925  ;;  %v2106_v23 = vpop.eup %1470  ;;  %v1100_v18 = vsel %vm2095_vm1, %v1099_v53, %v1095_v28  ;;  %v1046_v28 = vadd.f32 %v2068_v14, %v1045_v52  ;;  %vm1107_vm1 = vweird.f32 %v2050_v62 }
 0x138   :  { %v1103_v40 = vmul.f32 %v2106_v23, %v2050_v62  ;;  %vm1108_vm13 = vweird.f32 %v2106_v23 }
 0x139   :  { %v979_v59 = vmul.f32 %v948_v37, %v1973_v20  ;;  %v1473_v60 = vpop.eup %1472  ;;  %v884_v1 = vpop.xlane.xlu0 %883  ;;  %v1050_v3 = vsel %vm2236_vm10, %v2068_v14, %v1046_v28  ;;  %vm2257_vm11 = vmor %vm1107_vm1, %vm1108_vm13  ;;  %vm1167_vm13 = vweird.f32 %v2148_v19 }
 0x13a   :  { %v956_v26 = vmul.f32 0.6931472, %v1473_v60  ;;  %1476 = vlog2.f32 %v884_v1  ;;  %v2142_v8 = vpop.xlane.xlu2 %933  ;;  %v2171_v37 = vpop.eup %1474  ;;  %v1104_v24 = vsub.f32 1.0, %v1103_v40  ;;  %v1126_v1 = vand.u32 2147483647, %v2111_v57 }
 0x13b   :  { %v995_v6 = vsub.f32 %v2044_v51, %v979_v59  ;;  %v1150_v51 = vmul.f32 %v2053_v22, %v1149_v47  ;;  %1478 = vrcp.f32 %v2111_v57  ;;  %v1055_v12 = vsel %vm2217_vm2, %v2126_v2, %v1050_v3 }
 0x13c   :  { %v983_v5 = vmul.f32 %v956_v26, %v1986_v9  ;;  %1480 = vrcp.f32 %v2123_v55  ;;  %v1105_v7 = vmul.f32 %v2106_v23, %v1104_v24  ;;  %v2225_v24 = vor.u32 1.1754944e-38, %v1128_v4 }
 0x13d   :  { %v1041_v13 = vmul.f32 %v1040_v56, %v995_v6  ;;  %1482 = vrcp.f32 %v2148_v19  ;;  %v1151_v16 = vadd.f32 %v2053_v22, %v1150_v51  ;;  %v1081_v51 = vand.u32 2147483647, %v2080_v17 }
 0x13e   :  { %v999_v58 = vsub.f32 %v2038_v50, %v983_v5  ;;  %v1158_v50 = vand.u32 2147483648, %v2029_v41  ;;  %1484 = vrcp.f32 %v2158_v15  ;;  %v1083_v5 = vand.u32 2147483648, %v2080_v17 }
 0x13f   :  { %v1283_v44 = vsub.f32 0.0, %v1041_v13  ;;  %v2168_v10 = vpop.xlane.xlu1 %891  ;;  %v1155_v41 = vsel %vm2189_vm12, %v2053_v22, %v1151_v16  ;;  %v1141_v16 = vand.u32 2147483647, %v2123_v55  ;;  %v1173_v9 = vand.u32 2147483648, %v2148_v19 }
 0x140   :  { %v1477_v48 = vpop.eup %1476  ;;  %v1101_v47 = vmul.f32 %v1100_v18, %v999_v58  ;;  %v1159_v40 = vor.u32 1.1754944e-38, %v1158_v50  ;;  %v1113_v18 = vand.u32 2147483648, %v2050_v62  ;;  %vm2315_vm2 = vcmp.eq.f32.partialorder %v1081_v51, 8.507059e+37 }
 0x141   :  { %v1299_v30 = vsel %vm1267_vm3, %v1283_v44, 0.0  ;;  %v964_v54 = vmul.f32 0.6931472, %v1477_v48  ;;  %v878_v59 = vpop.xlane.xlu0 %877  ;;  %v2187_v20 = vpop.eup %1478  ;;  %vm1272_vm3 = vcmp.gt.f32.partialorder %v1997_v31, 0.0 }
 0x142   :  { %1316 = vst.msk [vmem:[%s2668_s4] sm:$0xff] %vm1315_vm6, %v1299_v30  ;;  %v1287_v53 = vsub.f32 0.0, %v1101_v47  ;;  %1486 = vlog2.f32 %v878_v59  ;;  %v870_v60 = vpop.xlane.xlu2 %869  ;;  %v2195_v56 = vpop.eup %1480  ;;  %v1118_v13 = vmul.f32 %v2187_v20, %v2111_v57  ;;  %v1160_v44 = vsel %vm1157_vm15, %v1159_v40, %v1155_v41 }
 0x143   :  { %v987_v6 = vmul.f32 %v964_v54, %v2001_v11  ;;  %1488 = vlog2.f32 %v870_v60  ;;  %v2206_v38 = vpop.eup %1482  ;;  %v1106_v30 = vadd.f32 %v2106_v23, %v1105_v7  ;;  %v1073_v47 = vmul.f32 %v2171_v37, %v2080_v17 }
 0x144   :  { %v1303_v26 = vsel %vm1271_vm8, %v1287_v53, 0.0  ;;  %v2228_v48 = vpop.eup %1484  ;;  %v2244_v52 = vmul.f32 %v2195_v56, %v2123_v55  ;;  %v1163_v43 = vmul.f32 %v2206_v38, %v2148_v19  ;;  %v1119_v59 = vsub.f32 1.0, %v1118_v13 }
 0x145   :  { %1320 = vst.msk [vmem:[%s2668_s4 + $0x20] sm:$0xff] %vm1315_vm6, %v1303_v26  ;;  %v1003_v22 = vsub.f32 %v2031_v42, %v987_v6  ;;  %v1114_v6 = vor.u32 1.1754944e-38, %v1113_v18  ;;  %v1110_v26 = vsel %vm2257_vm11, %v2106_v23, %v1106_v30  ;;  %v1074_v40 = vsub.f32 1.0, %v1073_v47 }
 0x146   :  { %vm1078_vm8 = vweird.f32 %v2171_v37  ;;  %v1178_v28 = vmul.f32 %v2228_v48, %v2158_v15  ;;  %v1164_v13 = vsub.f32 1.0, %v1163_v43  ;;  %v1134_v23 = vsub.f32 1.0, %v2244_v52 }
 0x147   :  { %v2223_v58 = vpop.xlane.xlu1 %919  ;;  %v1161_v42 = vmul.f32 %v1160_v44, %v1003_v22  ;;  %v2272_v22 = vmax.f32 %v2008_v35, 1.0  ;;  %v2282_v18 = vmax.f32 %v2016_v29, 1.0  ;;  %v1115_v30 = vsel %vm1112_vm7, %v1114_v6, %v1110_v26 }
 0x148   :  { %v1487_v50 = vpop.eup %1486  ;;  %v1120_v43 = vmul.f32 %v2187_v20, %v1119_v59  ;;  %v1075_v32 = vmul.f32 %v2171_v37, %v1074_v40  ;;  %v1165_v41 = vmul.f32 %v2206_v38, %v1164_v13  ;;  %v2301_v59 = vmax.f32 %v2005_v34, 1.0 }
 0x149   :  { %v1489_v54 = vpop.eup %1488  ;;  %v1291_v53 = vsub.f32 0.0, %v1161_v42  ;;  %v958_v60 = vmul.f32 0.6931472, %v1487_v50  ;;  %v872_v4 = vpop.xlane.xlu0 %871  ;;  %vm1123_vm12 = vweird.f32 %v2187_v20  ;;  %vm2307_vm15 = vcmp.eq.f32.partialorder %v1126_v1, 8.507059e+37 }
 0x14a   :  { %v950_v7 = vmul.f32 0.6931472, %v1489_v54  ;;  %1490 = vlog2.f32 %v872_v4  ;;  %v2261_v14 = vpop.xlane.xlu2 %927  ;;  %v1076_v1 = vadd.f32 %v2171_v37, %v1075_v32  ;;  %v1166_v13 = vadd.f32 %v2206_v38, %v1165_v41 }
 0x14b   :  { %v1307_v62 = vsel %vm1275_vm4, %v1291_v53, 0.0  ;;  %v984_v11 = vmul.f32 %v958_v60, %v1997_v31  ;;  %v1171_v53 = vand.u32 2147483647, %v2148_v19  ;;  %vm1168_vm10 = vweird.f32 %v2206_v38  ;;  %vm2365_vm4 = vmor %vm1077_vm9, %vm1078_vm8 }
 0x14c   :  { %1324 = vst.msk [vmem:[%s2668_s4 + $0x40] sm:$0xff] %vm1315_vm6, %v1307_v62  ;;  %v980_v44 = vmul.f32 %v950_v7, %v1978_v21  ;;  %v1121_v7 = vadd.f32 %v2187_v20, %v1120_v43  ;;  %v1174_v21 = vor.u32 1.1754944e-38, %v1173_v9  ;;  %vm1276_vm11 = vcmp.gt.f32.partialorder %v1999_v46, 0.0 }
 0x14d   :  { %v1000_v42 = vsub.f32 %v2092_v49, %v984_v11  ;;  %v1179_v49 = vsub.f32 1.0, %v1178_v28  ;;  %vm2338_vm1 = vcmp.eq.f32.partialorder %v1171_v53, 8.507059e+37  ;;  %v1080_v17 = vsel %vm2365_vm4, %v2171_v37, %v1076_v1 }
 0x14e   :  { %v996_v47 = vsub.f32 %v2057_v61, %v980_v44  ;;  %vm1183_vm8 = vweird.f32 %v2228_v48  ;;  %v1186_v19 = vand.u32 2147483647, %v2158_v15  ;;  %vm1137_vm9 = vweird.f32 %v2123_v55 }
 0x14f   :  { %v886_v50 = vpop.xlane.xlu1 %885  ;;  %v1116_v54 = vmul.f32 %v1115_v30, %v1000_v42  ;;  %v1180_v31 = vmul.f32 %v2228_v48, %v1179_v49  ;;  %v1201_v11 = vand.u32 2147483647, %v2272_v22 }
 0x150   :  { %1492 = vlog2.f32 %v886_v50  ;;  %v1491_v60 = vpop.eup %1490  ;;  %v1056_v4 = vmul.f32 %v1055_v12, %v996_v47  ;;  %v1084_v47 = vor.u32 1.1754944e-38, %v1083_v5 }
 0x151   :  { %1494 = vrcp.f32 %v2272_v22  ;;  %v1288_v2 = vsub.f32 0.0, %v1116_v54  ;;  %v952_v61 = vmul.f32 0.6931472, %v1491_v60  ;;  %v2297_v3 = vpop.xlane.xlu0 %929  ;;  %v1181_v49 = vadd.f32 %v2228_v48, %v1180_v31 }
 0x152   :  { %1496 = vrcp.f32 %v2282_v18  ;;  %v1284_v6 = vsub.f32 0.0, %v1056_v4  ;;  %v2311_v26 = vpop.xlane.xlu2 %893  ;;  %v1203_v31 = vand.u32 2147483648, %v2272_v22 }
 0x153   :  { %v1304_v40 = vsel %vm1272_vm3, %v1288_v2, 0.0  ;;  %v981_v28 = vmul.f32 %v952_v61, %v1982_v25  ;;  %vm2346_vm3 = vmor %vm1122_vm5, %vm1123_vm12  ;;  %1498 = vrcp.f32 %v2301_v59  ;;  %vm1182_vm5 = vweird.f32 %v2158_v15 }
 0x154   :  { %1321 = vst.msk [vmem:[%s2668_s4 + $0x28] sm:$0xff] %vm1315_vm6, %v1304_v40  ;;  %v1300_v51 = vsel %vm1268_vm14, %v1284_v6, 0.0  ;;  %v1125_v54 = vsel %vm2346_vm3, %v2187_v20, %v1121_v7  ;;  %vm2377_vm14 = vmor %vm1167_vm13, %vm1168_vm10  ;;  %v1188_v2 = vand.u32 2147483648, %v2158_v15  ;;  %v2398_v61 = vmax.f32 %v2019_v36, 1.0 }
 0x155   :  { %1317 = vst.msk [vmem:[%s2668_s4 + $0x8] sm:$0xff] %vm1315_vm6, %v1300_v51  ;;  %v997_v42 = vsub.f32 %v2223_v58, %v981_v28  ;;  %v2356_v58 = vmax.f32 %v2022_v39, 1.0  ;;  %v1170_v60 = vsel %vm2377_vm14, %v2206_v38, %v1166_v13  ;;  %v1130_v40 = vsel %vm2307_vm15, %v2225_v24, %v1125_v54  ;;  %vm2419_vm7 = vmor %vm1182_vm5, %vm1183_vm8 }
 0x156   :  { %v1493_v44 = vpop.eup %1492  ;;  %v1175_v15 = vsel %vm2338_vm1, %v1174_v21, %v1170_v60  ;;  %v2415_v28 = vsel %vm2315_vm2, %v1084_v47, %v1080_v17  ;;  %v1185_v62 = vsel %vm2419_vm7, %v2228_v48, %v1181_v49  ;;  %v1189_v51 = vor.u32 1.1754944e-38, %v1188_v2 }
 0x157   :  { %v2352_v50 = vpop.eup %1494  ;;  %v966_v43 = vmul.f32 0.6931472, %v1493_v44  ;;  %v880_v57 = vpop.xlane.xlu1 %879  ;;  %v1071_v32 = vmul.f32 %v2163_v63, %v997_v42  ;;  %v1135_v44 = vmul.f32 %v2195_v56, %v1134_v23  ;;  %vm1273_vm12 = vcmp.gt.f32.partialorder %v1993_v0, 0.0 }
 0x158   :  { %v2369_v5 = vpop.eup %1496  ;;  %1500 = vlog2.f32 %v880_v57  ;;  %v1193_v37 = vmul.f32 %v2352_v50, %v2272_v22  ;;  %vm1197_vm15 = vweird.f32 %v2272_v22  ;;  %v1231_v47 = vand.u32 2147483647, %v2282_v18 }
 0x159   :  { %v988_v63 = vmul.f32 %v966_v43, %v1999_v46  ;;  %v1285_v4 = vsub.f32 0.0, %v1071_v32  ;;  %v2391_v41 = vpop.xlane.xlu0 %895  ;;  %1502 = vrcp.f32 %v2356_v58  ;;  %v1223_v6 = vmul.f32 %v2369_v5, %v2282_v18  ;;  %v2424_v25 = vpop.eup %1498 }
 0x15a   :  { %v2402_v9 = vpop.xlane.xlu2 %921  ;;  %v1194_v13 = vsub.f32 1.0, %v1193_v37  ;;  %1504 = vrcp.f32 %v2398_v61  ;;  %v1208_v52 = vmul.f32 %v2424_v25, %v2301_v59  ;;  %vm1227_vm2 = vweird.f32 %v2282_v18 }
 0x15b   :  { %v1004_v38 = vsub.f32 %v2142_v8, %v988_v63  ;;  %v1301_v7 = vsel %vm1269_vm0, %v1285_v4, 0.0  ;;  %vm1187_vm0 = vcmp.eq.f32.partialorder %v1186_v19, 8.507059e+37  ;;  %v1224_v12 = vsub.f32 1.0, %v1223_v6 }
 0x15c   :  { %1318 = vst.msk [vmem:[%s2668_s4 + $0x10] sm:$0xff] %vm1315_vm6, %v1301_v7  ;;  %v2440_v48 = vsel %vm1187_vm0, %v1189_v51, %v1185_v62  ;;  %v1233_v57 = vand.u32 2147483648, %v2282_v18  ;;  %vm1138_vm13 = vweird.f32 %v2195_v56  ;;  %v1195_v32 = vmul.f32 %v2352_v50, %v1194_v13 }
 0x15d   :  { %v1176_v24 = vmul.f32 %v1175_v15, %v1004_v38  ;;  %v1136_v46 = vadd.f32 %v2195_v56, %v1135_v44  ;;  %v1143_v20 = vand.u32 2147483648, %v2123_v55  ;;  %v2463_v63 = vor.u32 1.1754944e-38, %v1203_v31  ;;  %vm2481_vm4 = vmor %vm1137_vm9, %vm1138_vm13 }
 0x15e   :  { %v1501_v1 = vpop.eup %1500  ;;  %v1225_v49 = vmul.f32 %v2369_v5, %v1224_v12  ;;  %vm1198_vm10 = vweird.f32 %v2352_v50  ;;  %v1209_v19 = vsub.f32 1.0, %v1208_v52  ;;  %vm2472_vm1 = vcmp.eq.f32.partialorder %v1201_v11, 8.507059e+37 }
 0x15f   :  { %v1292_v42 = vsub.f32 0.0, %v1176_v24  ;;  %v960_v30 = vmul.f32 0.6931472, %v1501_v1  ;;  %v874_v21 = vpop.xlane.xlu1 %873  ;;  %v2446_v43 = vpop.eup %1502  ;;  %vm1228_vm3 = vweird.f32 %v2369_v5  ;;  %v1196_v6 = vadd.f32 %v2352_v50, %v1195_v32  ;;  %vm2514_vm5 = vmor %vm1197_vm15, %vm1198_vm10 }
 0x160   :  { %1506 = vlog2.f32 %v874_v21  ;;  %v2469_v4 = vpop.eup %1504  ;;  %vm2492_vm14 = vcmp.eq.f32.partialorder %v1231_v47, 8.507059e+37  ;;  %v1234_v15 = vor.u32 1.1754944e-38, %v1233_v57  ;;  %v1144_v8 = vor.u32 1.1754944e-38, %v1143_v20  ;;  %vm2533_vm7 = vmor %vm1227_vm2, %vm1228_vm3 }
 0x161   :  { %v1308_v23 = vsel %vm1276_vm11, %v1292_v42, 0.0  ;;  %v985_v54 = vmul.f32 %v960_v30, %v1993_v0  ;;  %1508 = vlog2.f32 %v2311_v26  ;;  %v890_v53 = vpop.xlane.xlu0 %889  ;;  %v1238_v26 = vmul.f32 %v2446_v43, %v2356_v58 }
 0x162   :  { %1325 = vst.msk [vmem:[%s2668_s4 + $0x48] sm:$0xff] %vm1315_vm6, %v1308_v23  ;;  %1510 = vlog2.f32 %v890_v53  ;;  %v888_v60 = vpop.xlane.xlu2 %887  ;;  %vm2487_vm11 = vcmp.eq.f32.partialorder %v1141_v16, 8.507059e+37  ;;  %v1226_v16 = vadd.f32 %v2369_v5, %v1225_v49  ;;  %v1246_v11 = vand.u32 2147483647, %v2356_v58 }
 0x163   :  { %v1001_v17 = vsub.f32 %v2261_v14, %v985_v54  ;;  %1512 = vlog2.f32 %v888_v60  ;;  %vm1270_vm8 = vcmp.gt.f32.partialorder %v1990_v27, 0.0  ;;  %v1239_v51 = vsub.f32 1.0, %v1238_v26 }
 0x164   :  { %1514 = vlog2.f32 %v2168_v10  ;;  %v1248_v13 = vand.u32 2147483648, %v2356_v58  ;;  %v1210_v31 = vmul.f32 %v2424_v25, %v1209_v19  ;;  %v1253_v44 = vmul.f32 %v2469_v4, %v2398_v61 }
 0x165   :  { %v1131_v2 = vmul.f32 %v1130_v40, %v1001_v17  ;;  %v1140_v40 = vsel %vm2481_vm4, %v2195_v56, %v1136_v46  ;;  %1516 = vlog2.f32 %v2391_v41  ;;  %v1200_v22 = vsel %vm2514_vm5, %v2352_v50, %v1196_v6 }
 0x166   :  { %v1507_v10 = vpop.eup %1506  ;;  %v2520_v12 = vsel %vm2487_vm11, %v1144_v8, %v1140_v40  ;;  %vm1212_vm9 = vweird.f32 %v2301_v59  ;;  %vm1213_vm0 = vweird.f32 %v2424_v25  ;;  %v1230_v50 = vsel %vm2533_vm7, %v2369_v5, %v1226_v16 }
 0x167   :  { %v1289_v24 = vsub.f32 0.0, %v1131_v2  ;;  %v954_v62 = vmul.f32 0.6931472, %v1507_v10  ;;  %v898_v55 = vpop.xlane.xlu1 %897  ;;  %v1509_v1 = vpop.eup %1508  ;;  %v1216_v18 = vand.u32 2147483647, %v2301_v59  ;;  %vm1277_vm15 = vcmp.gt.f32.partialorder %v2003_v33, 0.0  ;;  %vm2563_vm10 = vmor %vm1212_vm9, %vm1213_vm0 }
 0x168   :  { %v1511_v56 = vpop.eup %1510  ;;  %v1240_v32 = vmul.f32 %v2446_v43, %v1239_v51  ;;  %v1211_v46 = vadd.f32 %v2424_v25, %v1210_v31  ;;  %v1254_v20 = vsub.f32 1.0, %v1253_v44  ;;  %vm1278_vm2 = vcmp.gt.f32.partialorder %v2008_v35, 0.0 }
 0x169   :  { %v1305_v42 = vsel %vm1273_vm12, %v1289_v24, 0.0  ;;  %v982_v30 = vmul.f32 %v954_v62, %v1990_v27  ;;  %v1513_v47 = vpop.eup %1512  ;;  %v970_v0 = vmul.f32 0.6931472, %v1511_v56  ;;  %v936_v41 = vpop.xlane.xlu0 %935  ;;  %vm1242_vm12 = vweird.f32 %v2356_v58 }
 0x16a   :  { %1322 = vst.msk [vmem:[%s2668_s4 + $0x30] sm:$0xff] %vm1315_vm6, %v1305_v42  ;;  %v1515_v23 = vpop.eup %1514  ;;  %v968_v57 = vmul.f32 0.6931472, %v1513_v47  ;;  %v882_v53 = vpop.xlane.xlu2 %881  ;;  %v1205_v26 = vsel %vm2472_vm1, %v2463_v63, %v1200_v22  ;;  %v1218_v19 = vand.u32 2147483648, %v2301_v59  ;;  %v1235_v6 = vsel %vm2492_vm14, %v1234_v15, %v1230_v50 }
 0x16b   :  { %v998_v54 = vsub.f32 %v2402_v9, %v982_v30  ;;  %1518 = vlog2.f32 %v882_v53  ;;  %v974_v9 = vmul.f32 0.6931472, %v1509_v1  ;;  %v972_v60 = vmul.f32 0.6931472, %v1515_v23  ;;  %v1517_v2 = vpop.eup %1516 }
 0x16c   :  { %1520 = vlog2.f32 %v898_v55  ;;  %v989_v5 = vmul.f32 %v968_v57, %v2003_v33  ;;  %v990_v49 = vmul.f32 %v970_v0, %v2008_v35  ;;  %vm1243_vm13 = vweird.f32 %v2446_v43 }
 0x16d   :  { %v1086_v17 = vmul.f32 %v2415_v28, %v998_v54  ;;  %vm1280_vm1 = vcmp.gt.f32.partialorder %v2016_v29, 0.0  ;;  %vm2568_vm3 = vcmp.eq.f32.partialorder %v1246_v11, 8.507059e+37  ;;  %v1215_v7 = vsel %vm2563_vm10, %v2424_v25, %v1211_v46  ;;  %vm2595_vm14 = vmor %vm1242_vm12, %vm1243_vm13 }
 0x16e   :  { %v1005_v38 = vsub.f32 %v936_v41, %v989_v5  ;;  %vm2575_vm4 = vcmp.eq.f32.partialorder %v1216_v18, 8.507059e+37  ;;  %v1255_v59 = vmul.f32 %v2469_v4, %v1254_v20  ;;  %v992_v24 = vmul.f32 %v974_v9, %v2016_v29 }
 0x16f   :  { %v1286_v37 = vsub.f32 0.0, %v1086_v17  ;;  %v938_v10 = vpop.xlane.xlu1 %937  ;;  %v1241_v62 = vadd.f32 %v2446_v43, %v1240_v32  ;;  %v976_v16 = vmul.f32 0.6931472, %v1517_v2  ;;  %v991_v1 = vmul.f32 %v972_v60, %v2005_v34 }
 0x170   :  { %v1006_v63 = vsub.f32 %v938_v10, %v990_v49  ;;  %v1191_v8 = vmul.f32 %v2440_v48, %v1005_v38  ;;  %v1219_v51 = vor.u32 1.1754944e-38, %v1218_v19  ;;  %vm1258_vm11 = vweird.f32 %v2469_v4 }
 0x171   :  { %v1302_v40 = vsel %vm1270_vm8, %v1286_v37, 0.0  ;;  %v1519_v55 = vpop.eup %1518  ;;  %v942_v11 = vpop.xlane.xlu0 %941  ;;  %v1256_v0 = vadd.f32 %v2469_v4, %v1255_v59  ;;  %v1245_v23 = vsel %vm2595_vm14, %v2446_v43, %v1241_v62  ;;  %v993_v50 = vmul.f32 %v976_v16, %v2022_v39 }
 0x172   :  { %1319 = vst.msk [vmem:[%s2668_s4 + $0x18] sm:$0xff] %vm1315_vm6, %v1302_v40  ;;  %v1206_v25 = vmul.f32 %v1205_v26, %v1006_v63  ;;  %v1521_v27 = vpop.eup %1520  ;;  %v1293_v31 = vsub.f32 0.0, %v1191_v8  ;;  %v1008_v44 = vsub.f32 %v942_v11, %v992_v24  ;;  %v962_v48 = vmul.f32 0.6931472, %v1519_v55  ;;  %v940_v56 = vpop.xlane.xlu2 %939 }
 0x173   :  { %v1220_v21 = vsel %vm2575_vm4, %v1219_v51, %v1215_v7  ;;  %v1007_v47 = vsub.f32 %v940_v56, %v991_v1  ;;  %v978_v54 = vmul.f32 0.6931472, %v1521_v27  ;;  %v1249_v18 = vor.u32 1.1754944e-38, %v1248_v13 }
 0x174   :  { %v1294_v42 = vsub.f32 0.0, %v1206_v25  ;;  %v1309_v41 = vsel %vm1277_vm15, %v1293_v31, 0.0  ;;  %v1236_v22 = vmul.f32 %v1235_v6, %v1008_v44  ;;  %v986_v52 = vmul.f32 %v962_v48, %v1995_v45 }
 0x175   :  { %1326 = vst.msk [vmem:[%s2668_s4 + $0x50] sm:$0xff] %vm1315_vm6, %v1309_v41  ;;  %v1221_v33 = vmul.f32 %v1220_v21, %v1007_v47  ;;  %v1263_v46 = vand.u32 2147483648, %v2398_v61  ;;  %vm1257_vm8 = vweird.f32 %v2398_v61  ;;  %v1261_v9 = vand.u32 2147483647, %v2398_v61 }
 0x176   :  { %v1310_v57 = vsel %vm1278_vm2, %v1294_v42, 0.0  ;;  %v1296_v53 = vsub.f32 0.0, %v1236_v22  ;;  %v1002_v43 = vsub.f32 %v2297_v3, %v986_v52  ;;  %vm1279_vm5 = vcmp.gt.f32.partialorder %v2005_v34, 0.0  ;;  %vm2633_vm7 = vmor %vm1257_vm8, %vm1258_vm11 }
 0x177   :  { %1327 = vst.msk [vmem:[%s2668_s4 + $0x58] sm:$0xff] %vm1315_vm6, %v1310_v57  ;;  %v944_v32 = vpop.xlane.xlu1 %943  ;;  %v1295_v35 = vsub.f32 0.0, %v1221_v33  ;;  %v1250_v3 = vsel %vm2568_vm3, %v1249_v18, %v1245_v23  ;;  %v1260_v29 = vsel %vm2633_vm7, %v2469_v4, %v1256_v0  ;;  %v994_v13 = vmul.f32 %v978_v54, %v2019_v36 }
 0x178   :  { %v1009_v20 = vsub.f32 %v944_v32, %v993_v50  ;;  %v1312_v17 = vsel %vm1280_vm1, %v1296_v53, 0.0  ;;  %v1146_v5 = vmul.f32 %v2520_v12, %v1002_v43  ;;  %v1264_v60 = vor.u32 1.1754944e-38, %v1263_v46 }
 0x179   :  { %1329 = vst.msk [vmem:[%s2668_s4 + $0x68] sm:$0xff] %vm1315_vm6, %v1312_v17  ;;  %v1311_v61 = vsel %vm1279_vm5, %v1295_v35, 0.0  ;;  %vm1274_vm9 = vcmp.gt.f32.partialorder %v1995_v45, 0.0  ;;  %vm1262_vm0 = vcmp.eq.f32.partialorder %v1261_v9, 8.507059e+37  ;;  %vm1281_vm12 = vcmp.gt.f32.partialorder %v2022_v39, 0.0 }
 0x17a   :  { %v1251_v34 = vmul.f32 %v1250_v3, %v1009_v20  ;;  %v1290_v12 = vsub.f32 0.0, %v1146_v5  ;;  %1328 = vst.msk [vmem:[%s2668_s4 + $0x60] sm:$0xff] %vm1315_vm6, %v1311_v61  ;;  %v946_v49 = vpop.xlane.xlu2 %945  ;;  %v1265_v37 = vsel %vm1262_vm0, %v1264_v60, %v1260_v29  ;;  %vm1282_vm15 = vcmp.gt.f32.partialorder %v2019_v36, 0.0 }
 0x17b   :  { %v1010_v19 = vsub.f32 %v946_v49, %v994_v13 }
 0x17c   :  { %v1297_v26 = vsub.f32 0.0, %v1251_v34  ;;  %v1306_v2 = vsel %vm1274_vm9, %v1290_v12, 0.0 }
 0x17d   :  { %1323 = vst.msk [vmem:[%s2668_s4 + $0x38] sm:$0xff] %vm1315_vm6, %v1306_v2  ;;  %v1266_v38 = vmul.f32 %v1265_v37, %v1010_v19 }
 0x17e   :  { %v1313_v4 = vsel %vm1281_vm12, %v1297_v26, 0.0 }
 0x17f   :  { %1330 = vst.msk [vmem:[%s2668_s4 + $0x70] sm:$0xff] %vm1315_vm6, %v1313_v4  ;;  %v1298_v45 = vsub.f32 0.0, %v1266_v38 }
 0x181   :  { %v1314_v10 = vsel %vm1282_vm15, %v1298_v45, 0.0 }
 0x182   :  { %1331 = vst.msk [vmem:[%s2668_s4 + $0x78] sm:$0xff] %vm1315_vm6, %v1314_v10 }
 0x183   :  { %1336 = vsyncpa [#allocation6], 1 }

</bundles_post_ra>
